<compile_context>
chip_gen: v7x
topology: tpu7x:2x2x1
jax: 0.10.0
libtpu: 0.0.40
codegen_flags: <defaults>
</compile_context>

<pallas_src>
import functools

import numpy as np
import jax
import jax.numpy as jnp
from jax.experimental import pallas as pl
from jax.experimental.pallas import tpu as pltpu

BN_EPS = 1e-5
FRONT_ROWS = 8   # zero rows before the image in the flattened-H layout (>= 2)
BACK_ROWS = 2    # zero rows after the image (>= 2)


def _bilinear_matrix(in_len, out_len):
    """M (out_len, in_len) s.t. y = M @ x reproduces nn.Upsample(bilinear,
    align_corners=True) along one axis."""
    M = np.zeros((out_len, in_len), dtype=np.float32)
    for o in range(out_len):
        src = 0.0 if out_len == 1 else o * (in_len - 1) / (out_len - 1)
        i0 = int(np.floor(src))
        i1 = min(i0 + 1, in_len - 1)
        w1 = src - i0
        M[o, i0] += 1.0 - w1
        M[o, i1] += w1
    return M


def _upsample_flat_matrix(H1, W1, H2, W2):
    """K^T of shape (H1*W1, FLAT) such that  x1_flat @ K^T  equals
    flatten(F.pad(upsample2x(x1))) in the flattened-H-padded layout."""
    Hu, Wu = 2 * H1, 2 * W1
    top = (H2 - Hu) // 2
    left = (W2 - Wu) // 2
    Mh = _bilinear_matrix(H1, Hu)   # (Hu, H1)
    Mw = _bilinear_matrix(W1, Wu)   # (Wu, W1)
    flat = (FRONT_ROWS + H2 + BACK_ROWS) * W2
    K = np.zeros((flat, H1 * W1), np.float32)
    for yo in range(Hu):
        for xo in range(Wu):
            p = (FRONT_ROWS + top + yo) * W2 + (left + xo)
            K[p, :] = np.kron(Mh[yo], Mw[xo])
    return jnp.asarray(K.T)          # (H1*W1, FLAT)


def up_kernel(x1f_ref, x2f_ref, kt_ref, ml_ref, mr_ref,
              w1_ref, g1_ref, b1_ref, w2_ref, g2_ref, b2_ref,
              out_ref,
              xcat_ref, h_ref,
              *, N, C1, C2, Cmid, Cout, H2, W2):
    Cin = C1 + C2
    S = H2 * W2
    IMG = FRONT_ROWS * W2            # lane offset of image row 0
    cnt = float(N * S)

    mask_l = ml_ref[...]             # (1, S): 0 where x == 0
    mask_r = mr_ref[...]             # (1, S): 0 where x == W2-1

    # ---- 1) bilinear 2x upsample + F.pad : ONE batched MXU matmul ----------
    up_all = jnp.dot(x1f_ref[...], kt_ref[...],
                     preferred_element_type=jnp.float32)       # (N*C1, FLAT)

    # ---- 2) build channel-concat [x2, up(x1)] in flattened layout ----------
    for n in range(N):
        xcat_ref[n, 0:C2, :] = x2f_ref[n]
        xcat_ref[n, C2:Cin, :] = up_all[n * C1:(n + 1) * C1, :]

    # ---- 3x3 conv (pad=1, no bias) as 9 per-tap channel matmuls ------------
    def conv3x3(src_ref, n, w_ref, n_out):
        acc_l = jnp.zeros((n_out, S), jnp.float32)
        acc_c = jnp.zeros((n_out, S), jnp.float32)
        acc_r = jnp.zeros((n_out, S), jnp.float32)
        for dy in range(3):
            base = IMG + (dy - 1) * W2
            acc_l = acc_l + jnp.dot(w_ref[dy, 0],
                                    src_ref[n, :, base - 1:base - 1 + S],
                                    preferred_element_type=jnp.float32)
            acc_c = acc_c + jnp.dot(w_ref[dy, 1],
                                    src_ref[n, :, base:base + S],
                                    preferred_element_type=jnp.float32)
            acc_r = acc_r + jnp.dot(w_ref[dy, 2],
                                    src_ref[n, :, base + 1:base + 1 + S],
                                    preferred_element_type=jnp.float32)
        # left/right taps wrap around the row boundary in the flattened
        # layout; the masks zero exactly those (zero-padded) positions.
        return acc_c + mask_l * acc_l + mask_r * acc_r

    # ---- 3) conv1 -----------------------------------------------------------
    c1 = [conv3x3(xcat_ref, n, w1_ref, Cmid) for n in range(N)]

    # ---- 4) BN1 (train-mode biased batch stats, fused single pass) + ReLU ---
    # TODO(synk): running_mean/running_var momentum updates (training-time side
    # effect) are not modeled; they do not affect the forward output.
    h_ref[...] = jnp.zeros_like(h_ref)     # zero padding rows for conv2
    s1 = sum(jnp.sum(c, axis=-1, keepdims=True) for c in c1)          # (Cmid,1)
    q1 = sum(jnp.sum(c * c, axis=-1, keepdims=True) for c in c1)
    mean1 = s1 / cnt
    var1 = q1 / cnt - mean1 * mean1
    scale1 = jax.lax.rsqrt(var1 + BN_EPS) * g1_ref[...]
    shift1 = b1_ref[...] - mean1 * scale1
    for n in range(N):
        h_ref[n, :, IMG:IMG + S] = jnp.maximum(c1[n] * scale1 + shift1, 0.0)

    # ---- 5) conv2 -----------------------------------------------------------
    c2 = [conv3x3(h_ref, n, w2_ref, Cout) for n in range(N)]

    # ---- 6) BN2 + ReLU, lane-dense output -----------------------------------
    s2 = sum(jnp.sum(c, axis=-1, keepdims=True) for c in c2)          # (Cout,1)
    q2 = sum(jnp.sum(c * c, axis=-1, keepdims=True) for c in c2)
    mean2 = s2 / cnt
    var2 = q2 / cnt - mean2 * mean2
    scale2 = jax.lax.rsqrt(var2 + BN_EPS) * g2_ref[...]
    shift2 = b2_ref[...] - mean2 * scale2
    for n in range(N):
        out_ref[n] = jnp.maximum(c2[n] * scale2 + shift2, 0.0)


def init_up_params(key, in_channels, out_channels, bilinear=True):
    """Deterministic init mirroring PyTorch defaults (Conv2d: kaiming-uniform
    bound 1/sqrt(fan_in); BN: weight=1, bias=0)."""
    assert bilinear, "only the bilinear branch of Up is implemented"
    mid = in_channels // 2
    k1, k2 = jax.random.split(key)
    bound1 = 1.0 / np.sqrt(in_channels * 9)
    bound2 = 1.0 / np.sqrt(mid * 9)
    return {
        "w1": jax.random.uniform(k1, (mid, in_channels, 3, 3), jnp.float32,
                                 -bound1, bound1),
        "w2": jax.random.uniform(k2, (out_channels, mid, 3, 3), jnp.float32,
                                 -bound2, bound2),
        "g1": jnp.ones((mid,), jnp.float32),
        "b1": jnp.zeros((mid,), jnp.float32),
        "g2": jnp.ones((out_channels,), jnp.float32),
        "b2": jnp.zeros((out_channels,), jnp.float32),
    }


def up_forward(x1, x2, params):
    """Up.forward(x1, x2) — x1: (N, C1, H1, W1), x2: (N, C2, H2, W2) in NCHW."""
    N, C1, H1, W1 = x1.shape
    N2, C2, H2, W2 = x2.shape
    assert N == N2
    # TODO(synk): negative F.pad (crop) when x2 is smaller than 2*x1 is not handled.
    assert H2 >= 2 * H1 and W2 >= 2 * W1
    Cmid = params["w1"].shape[0]
    Cout = params["w2"].shape[0]
    Cin = C1 + C2
    assert params["w1"].shape[1] == Cin
    S = H2 * W2
    FLAT = (FRONT_ROWS + H2 + BACK_ROWS) * W2

    # ---- layout plumbing only (no compute hoisted into the wrapper) --------
    x1f = x1.astype(jnp.float32).reshape(N * C1, H1 * W1)
    x2f = jnp.pad(x2.astype(jnp.float32),
                  ((0, 0), (0, 0), (FRONT_ROWS, BACK_ROWS), (0, 0))
                  ).reshape(N, C2, FLAT)
    kt = _upsample_flat_matrix(H1, W1, H2, W2)                 # (H1*W1, FLAT)

    cols = np.arange(S) % W2
    mask_l = jnp.asarray((cols != 0).astype(np.float32)[None, :])       # (1,S)
    mask_r = jnp.asarray((cols != W2 - 1).astype(np.float32)[None, :])  # (1,S)

    w1 = jnp.transpose(params["w1"].astype(jnp.float32), (2, 3, 0, 1))  # (3,3,Cmid,Cin)
    w2 = jnp.transpose(params["w2"].astype(jnp.float32), (2, 3, 0, 1))  # (3,3,Cout,Cmid)
    g1 = params["g1"].astype(jnp.float32).reshape(Cmid, 1)
    b1 = params["b1"].astype(jnp.float32).reshape(Cmid, 1)
    g2 = params["g2"].astype(jnp.float32).reshape(Cout, 1)
    b2 = params["b2"].astype(jnp.float32).reshape(Cout, 1)

    kernel = functools.partial(up_kernel, N=N, C1=C1, C2=C2, Cmid=Cmid,
                               Cout=Cout, H2=H2, W2=W2)
    vmem = pl.BlockSpec(memory_space=pltpu.MemorySpace.VMEM)

    out_flat = pl.pallas_call(
        kernel,
        out_shape=jax.ShapeDtypeStruct((N, Cout, S), jnp.float32),
        in_specs=[vmem] * 11,
        out_specs=vmem,
        scratch_shapes=[
            pltpu.VMEM((N, Cin, FLAT), jnp.float32),   # concat input (flat, H-padded)
            pltpu.VMEM((N, Cmid, FLAT), jnp.float32),  # BN1+ReLU output (conv2 input)
        ],
    )(x1f, x2f, kt, mask_l, mask_r, w1, g1, b1, w2, g2, b2)

    return out_flat.reshape(N, Cout, H2, W2)


if __name__ == "__main__":
    key = jax.random.PRNGKey(0)
    kp, kx1, kx2 = jax.random.split(key, 3)

    # Small UNet-like shapes: deep feature x1 and skip connection x2.
    N, C1, H1, W1 = 2, 4, 8, 8
    C2, H2, W2 = 4, 16, 16
    in_channels, out_channels = C1 + C2, 4   # Up(8, 4, bilinear=True)

    params = init_up_params(kp, in_channels, out_channels, bilinear=True)
    x1 = jax.random.normal(kx1, (N, C1, H1, W1), jnp.float32)
    x2 = jax.random.normal(kx2, (N, C2, H2, W2), jnp.float32)

    out = up_forward(x1, x2, params)
    out = jax.block_until_ready(out)
    assert out.shape == (N, out_channels, H2, W2)
    assert bool(jnp.all(jnp.isfinite(out)))
    assert bool(jnp.all(out >= 0.0))   # final ReLU
    print("KERNEL_OK")
</pallas_src>

<mosaic_0001>
module attributes {stable_mosaic.version = 11 : i64} {
  func.func @up_kernel(%arg0: memref<8x64xf32, #tpu.memory_space<vmem>>, %arg1: memref<2x4x416xf32, #tpu.memory_space<vmem>>, %arg2: memref<64x416xf32, #tpu.memory_space<vmem>>, %arg3: memref<1x256xf32, #tpu.memory_space<vmem>>, %arg4: memref<1x256xf32, #tpu.memory_space<vmem>>, %arg5: memref<3x3x4x8xf32, #tpu.memory_space<vmem>>, %arg6: memref<4x1xf32, #tpu.memory_space<vmem>>, %arg7: memref<4x1xf32, #tpu.memory_space<vmem>>, %arg8: memref<3x3x4x4xf32, #tpu.memory_space<vmem>>, %arg9: memref<4x1xf32, #tpu.memory_space<vmem>>, %arg10: memref<4x1xf32, #tpu.memory_space<vmem>>, %arg11: memref<2x4x256xf32, #tpu.memory_space<vmem>>, %arg12: memref<2x8x416xf32, #tpu.memory_space<vmem>>, %arg13: memref<2x4x416xf32, #tpu.memory_space<vmem>>) attributes {dimension_semantics = [], scalar_prefetch = 0 : i64, scratch_operands = 2 : i64, tpu.core_type = #tpu.core_type<tc>} {
    %c0 = arith.constant 0 : index
    %c0_0 = arith.constant 0 : index
    %0 = vector.load %arg3[%c0, %c0_0] : memref<1x256xf32, #tpu.memory_space<vmem>>, vector<1x256xf32>
    %c0_1 = arith.constant 0 : index
    %c0_2 = arith.constant 0 : index
    %1 = vector.load %arg4[%c0_1, %c0_2] : memref<1x256xf32, #tpu.memory_space<vmem>>, vector<1x256xf32>
    %c0_3 = arith.constant 0 : index
    %c0_4 = arith.constant 0 : index
    %2 = vector.load %arg0[%c0_3, %c0_4] : memref<8x64xf32, #tpu.memory_space<vmem>>, vector<8x64xf32>
    %c0_5 = arith.constant 0 : index
    %c0_6 = arith.constant 0 : index
    %3 = vector.load %arg2[%c0_5, %c0_6] : memref<64x416xf32, #tpu.memory_space<vmem>>, vector<64x416xf32>
    %cst = arith.constant dense<0.000000e+00> : vector<8x416xf32>
    %4 = tpu.matmul %2, %3, %cst {dimension_numbers = #tpu.dot_dimension_numbers<[1], [0], [0], [1], [0, 0, 1, 1], [], []>} : vector<8x64xf32>, vector<64x416xf32>, vector<8x416xf32> -> vector<8x416xf32>
    %c0_7 = arith.constant 0 : index
    %c0_8 = arith.constant 0 : index
    %c0_9 = arith.constant 0 : index
    %5 = vector.load %arg1[%c0_7, %c0_8, %c0_9] : memref<2x4x416xf32, #tpu.memory_space<vmem>>, vector<1x4x416xf32>
    %6 = vector.shape_cast %5 : vector<1x4x416xf32> to vector<4x416xf32>
    %c0_10 = arith.constant 0 : index
    %c0_11 = arith.constant 0 : index
    %c0_12 = arith.constant 0 : index
    %7 = vector.load %arg12[%c0_10, %c0_11, %c0_12] : memref<2x8x416xf32, #tpu.memory_space<vmem>>, vector<1x4x416xf32>
    %8 = vector.shape_cast %7 : vector<1x4x416xf32> to vector<4x416xf32>
    %9 = vector.shape_cast %6 : vector<4x416xf32> to vector<1x4x416xf32>
    tpu.vector_store %arg12[%c0_10, %c0_11, %c0_12], %9 {strides = array<i32>} : memref<2x8x416xf32, #tpu.memory_space<vmem>>, vector<1x4x416xf32>,
    %10 = vector.extract_strided_slice %4 {offsets = [0, 0], sizes = [4, 416], strides = [1, 1]} : vector<8x416xf32> to vector<4x416xf32>
    %c0_13 = arith.constant 0 : index
    %c4 = arith.constant 4 : index
    %c0_14 = arith.constant 0 : index
    %11 = vector.load %arg12[%c0_13, %c4, %c0_14] : memref<2x8x416xf32, #tpu.memory_space<vmem>>, vector<1x4x416xf32>
    %12 = vector.shape_cast %11 : vector<1x4x416xf32> to vector<4x416xf32>
    %13 = vector.shape_cast %10 : vector<4x416xf32> to vector<1x4x416xf32>
    tpu.vector_store %arg12[%c0_13, %c4, %c0_14], %13 {strides = array<i32>} : memref<2x8x416xf32, #tpu.memory_space<vmem>>, vector<1x4x416xf32>,
    %c1 = arith.constant 1 : index
    %c0_15 = arith.constant 0 : index
    %c0_16 = arith.constant 0 : index
    %14 = vector.load %arg1[%c1, %c0_15, %c0_16] : memref<2x4x416xf32, #tpu.memory_space<vmem>>, vector<1x4x416xf32>
    %15 = vector.shape_cast %14 : vector<1x4x416xf32> to vector<4x416xf32>
    %c1_17 = arith.constant 1 : index
    %c0_18 = arith.constant 0 : index
    %c0_19 = arith.constant 0 : index
    %16 = vector.load %arg12[%c1_17, %c0_18, %c0_19] : memref<2x8x416xf32, #tpu.memory_space<vmem>>, vector<1x4x416xf32>
    %17 = vector.shape_cast %16 : vector<1x4x416xf32> to vector<4x416xf32>
    %18 = vector.shape_cast %15 : vector<4x416xf32> to vector<1x4x416xf32>
    tpu.vector_store %arg12[%c1_17, %c0_18, %c0_19], %18 {strides = array<i32>} : memref<2x8x416xf32, #tpu.memory_space<vmem>>, vector<1x4x416xf32>,
    %19 = vector.extract_strided_slice %4 {offsets = [4, 0], sizes = [4, 416], strides = [1, 1]} : vector<8x416xf32> to vector<4x416xf32>
    %c1_20 = arith.constant 1 : index
    %c4_21 = arith.constant 4 : index
    %c0_22 = arith.constant 0 : index
    %20 = vector.load %arg12[%c1_20, %c4_21, %c0_22] : memref<2x8x416xf32, #tpu.memory_space<vmem>>, vector<1x4x416xf32>
    %21 = vector.shape_cast %20 : vector<1x4x416xf32> to vector<4x416xf32>
    %22 = vector.shape_cast %19 : vector<4x416xf32> to vector<1x4x416xf32>
    tpu.vector_store %arg12[%c1_20, %c4_21, %c0_22], %22 {strides = array<i32>} : memref<2x8x416xf32, #tpu.memory_space<vmem>>, vector<1x4x416xf32>,
    %cst_23 = arith.constant 0.000000e+00 : f32
    %23 = vector.broadcast %cst_23 : f32 to vector<4x256xf32>
    %cst_24 = arith.constant 0.000000e+00 : f32
    %24 = vector.broadcast %cst_24 : f32 to vector<4x256xf32>
    %cst_25 = arith.constant 0.000000e+00 : f32
    %25 = vector.broadcast %cst_25 : f32 to vector<4x256xf32>
    %c0_26 = arith.constant 0 : index
    %c0_27 = arith.constant 0 : index
    %c0_28 = arith.constant 0 : index
    %c0_29 = arith.constant 0 : index
    %26 = vector.load %arg5[%c0_26, %c0_27, %c0_28, %c0_29] : memref<3x3x4x8xf32, #tpu.memory_space<vmem>>, vector<1x1x4x8xf32>
    %27 = vector.shape_cast %26 : vector<1x1x4x8xf32> to vector<4x8xf32>
    %c0_30 = arith.constant 0 : index
    %c0_31 = arith.constant 0 : index
    %c111 = arith.constant 111 : index
    %28 = vector.load %arg12[%c0_30, %c0_31, %c111] : memref<2x8x416xf32, #tpu.memory_space<vmem>>, vector<1x8x256xf32>
    %29 = vector.shape_cast %28 : vector<1x8x256xf32> to vector<8x256xf32>
    %cst_32 = arith.constant dense<0.000000e+00> : vector<4x256xf32>
    %30 = tpu.matmul %27, %29, %cst_32 {dimension_numbers = #tpu.dot_dimension_numbers<[1], [0], [0], [1], [0, 0, 1, 1], [], []>} : vector<4x8xf32>, vector<8x256xf32>, vector<4x256xf32> -> vector<4x256xf32>
    %31 = arith.addf %23, %30 : vector<4x256xf32>
    %c0_33 = arith.constant 0 : index
    %c1_34 = arith.constant 1 : index
    %c0_35 = arith.constant 0 : index
    %c0_36 = arith.constant 0 : index
    %32 = vector.load %arg5[%c0_33, %c1_34, %c0_35, %c0_36] : memref<3x3x4x8xf32, #tpu.memory_space<vmem>>, vector<1x1x4x8xf32>
    %33 = vector.shape_cast %32 : vector<1x1x4x8xf32> to vector<4x8xf32>
    %c0_37 = arith.constant 0 : index
    %c0_38 = arith.constant 0 : index
    %c112 = arith.constant 112 : index
    %34 = vector.load %arg12[%c0_37, %c0_38, %c112] : memref<2x8x416xf32, #tpu.memory_space<vmem>>, vector<1x8x256xf32>
    %35 = vector.shape_cast %34 : vector<1x8x256xf32> to vector<8x256xf32>
    %cst_39 = arith.constant dense<0.000000e+00> : vector<4x256xf32>
    %36 = tpu.matmul %33, %35, %cst_39 {dimension_numbers = #tpu.dot_dimension_numbers<[1], [0], [0], [1], [0, 0, 1, 1], [], []>} : vector<4x8xf32>, vector<8x256xf32>, vector<4x256xf32> -> vector<4x256xf32>
    %37 = arith.addf %24, %36 : vector<4x256xf32>
    %c0_40 = arith.constant 0 : index
    %c2 = arith.constant 2 : index
    %c0_41 = arith.constant 0 : index
    %c0_42 = arith.constant 0 : index
    %38 = vector.load %arg5[%c0_40, %c2, %c0_41, %c0_42] : memref<3x3x4x8xf32, #tpu.memory_space<vmem>>, vector<1x1x4x8xf32>
    %39 = vector.shape_cast %38 : vector<1x1x4x8xf32> to vector<4x8xf32>
    %c0_43 = arith.constant 0 : index
    %c0_44 = arith.constant 0 : index
    %c113 = arith.constant 113 : index
    %40 = vector.load %arg12[%c0_43, %c0_44, %c113] : memref<2x8x416xf32, #tpu.memory_space<vmem>>, vector<1x8x256xf32>
    %41 = vector.shape_cast %40 : vector<1x8x256xf32> to vector<8x256xf32>
    %cst_45 = arith.constant dense<0.000000e+00> : vector<4x256xf32>
    %42 = tpu.matmul %39, %41, %cst_45 {dimension_numbers = #tpu.dot_dimension_numbers<[1], [0], [0], [1], [0, 0, 1, 1], [], []>} : vector<4x8xf32>, vector<8x256xf32>, vector<4x256xf32> -> vector<4x256xf32>
    %43 = arith.addf %25, %42 : vector<4x256xf32>
    %c1_46 = arith.constant 1 : index
    %c0_47 = arith.constant 0 : index
    %c0_48 = arith.constant 0 : index
    %c0_49 = arith.constant 0 : index
    %44 = vector.load %arg5[%c1_46, %c0_47, %c0_48, %c0_49] : memref<3x3x4x8xf32, #tpu.memory_space<vmem>>, vector<1x1x4x8xf32>
    %45 = vector.shape_cast %44 : vector<1x1x4x8xf32> to vector<4x8xf32>
    %c0_50 = arith.constant 0 : index
    %c0_51 = arith.constant 0 : index
    %c127 = arith.constant 127 : index
    %46 = vector.load %arg12[%c0_50, %c0_51, %c127] : memref<2x8x416xf32, #tpu.memory_space<vmem>>, vector<1x8x256xf32>
    %47 = vector.shape_cast %46 : vector<1x8x256xf32> to vector<8x256xf32>
    %cst_52 = arith.constant dense<0.000000e+00> : vector<4x256xf32>
    %48 = tpu.matmul %45, %47, %cst_52 {dimension_numbers = #tpu.dot_dimension_numbers<[1], [0], [0], [1], [0, 0, 1, 1], [], []>} : vector<4x8xf32>, vector<8x256xf32>, vector<4x256xf32> -> vector<4x256xf32>
    %49 = arith.addf %31, %48 : vector<4x256xf32>
    %c1_53 = arith.constant 1 : index
    %c1_54 = arith.constant 1 : index
    %c0_55 = arith.constant 0 : index
    %c0_56 = arith.constant 0 : index
    %50 = vector.load %arg5[%c1_53, %c1_54, %c0_55, %c0_56] : memref<3x3x4x8xf32, #tpu.memory_space<vmem>>, vector<1x1x4x8xf32>
    %51 = vector.shape_cast %50 : vector<1x1x4x8xf32> to vector<4x8xf32>
    %c0_57 = arith.constant 0 : index
    %c0_58 = arith.constant 0 : index
    %c128 = arith.constant 128 : index
    %52 = vector.load %arg12[%c0_57, %c0_58, %c128] : memref<2x8x416xf32, #tpu.memory_space<vmem>>, vector<1x8x256xf32>
    %53 = vector.shape_cast %52 : vector<1x8x256xf32> to vector<8x256xf32>
    %cst_59 = arith.constant dense<0.000000e+00> : vector<4x256xf32>
    %54 = tpu.matmul %51, %53, %cst_59 {dimension_numbers = #tpu.dot_dimension_numbers<[1], [0], [0], [1], [0, 0, 1, 1], [], []>} : vector<4x8xf32>, vector<8x256xf32>, vector<4x256xf32> -> vector<4x256xf32>
    %55 = arith.addf %37, %54 : vector<4x256xf32>
    %c1_60 = arith.constant 1 : index
    %c2_61 = arith.constant 2 : index
    %c0_62 = arith.constant 0 : index
    %c0_63 = arith.constant 0 : index
    %56 = vector.load %arg5[%c1_60, %c2_61, %c0_62, %c0_63] : memref<3x3x4x8xf32, #tpu.memory_space<vmem>>, vector<1x1x4x8xf32>
    %57 = vector.shape_cast %56 : vector<1x1x4x8xf32> to vector<4x8xf32>
    %c0_64 = arith.constant 0 : index
    %c0_65 = arith.constant 0 : index
    %c129 = arith.constant 129 : index
    %58 = vector.load %arg12[%c0_64, %c0_65, %c129] : memref<2x8x416xf32, #tpu.memory_space<vmem>>, vector<1x8x256xf32>
    %59 = vector.shape_cast %58 : vector<1x8x256xf32> to vector<8x256xf32>
    %cst_66 = arith.constant dense<0.000000e+00> : vector<4x256xf32>
    %60 = tpu.matmul %57, %59, %cst_66 {dimension_numbers = #tpu.dot_dimension_numbers<[1], [0], [0], [1], [0, 0, 1, 1], [], []>} : vector<4x8xf32>, vector<8x256xf32>, vector<4x256xf32> -> vector<4x256xf32>
    %61 = arith.addf %43, %60 : vector<4x256xf32>
    %c2_67 = arith.constant 2 : index
    %c0_68 = arith.constant 0 : index
    %c0_69 = arith.constant 0 : index
    %c0_70 = arith.constant 0 : index
    %62 = vector.load %arg5[%c2_67, %c0_68, %c0_69, %c0_70] : memref<3x3x4x8xf32, #tpu.memory_space<vmem>>, vector<1x1x4x8xf32>
    %63 = vector.shape_cast %62 : vector<1x1x4x8xf32> to vector<4x8xf32>
    %c0_71 = arith.constant 0 : index
    %c0_72 = arith.constant 0 : index
    %c143 = arith.constant 143 : index
    %64 = vector.load %arg12[%c0_71, %c0_72, %c143] : memref<2x8x416xf32, #tpu.memory_space<vmem>>, vector<1x8x256xf32>
    %65 = vector.shape_cast %64 : vector<1x8x256xf32> to vector<8x256xf32>
    %cst_73 = arith.constant dense<0.000000e+00> : vector<4x256xf32>
    %66 = tpu.matmul %63, %65, %cst_73 {dimension_numbers = #tpu.dot_dimension_numbers<[1], [0], [0], [1], [0, 0, 1, 1], [], []>} : vector<4x8xf32>, vector<8x256xf32>, vector<4x256xf32> -> vector<4x256xf32>
    %67 = arith.addf %49, %66 : vector<4x256xf32>
    %c2_74 = arith.constant 2 : index
    %c1_75 = arith.constant 1 : index
    %c0_76 = arith.constant 0 : index
    %c0_77 = arith.constant 0 : index
    %68 = vector.load %arg5[%c2_74, %c1_75, %c0_76, %c0_77] : memref<3x3x4x8xf32, #tpu.memory_space<vmem>>, vector<1x1x4x8xf32>
    %69 = vector.shape_cast %68 : vector<1x1x4x8xf32> to vector<4x8xf32>
    %c0_78 = arith.constant 0 : index
    %c0_79 = arith.constant 0 : index
    %c144 = arith.constant 144 : index
    %70 = vector.load %arg12[%c0_78, %c0_79, %c144] : memref<2x8x416xf32, #tpu.memory_space<vmem>>, vector<1x8x256xf32>
    %71 = vector.shape_cast %70 : vector<1x8x256xf32> to vector<8x256xf32>
    %cst_80 = arith.constant dense<0.000000e+00> : vector<4x256xf32>
    %72 = tpu.matmul %69, %71, %cst_80 {dimension_numbers = #tpu.dot_dimension_numbers<[1], [0], [0], [1], [0, 0, 1, 1], [], []>} : vector<4x8xf32>, vector<8x256xf32>, vector<4x256xf32> -> vector<4x256xf32>
    %73 = arith.addf %55, %72 : vector<4x256xf32>
    %c2_81 = arith.constant 2 : index
    %c2_82 = arith.constant 2 : index
    %c0_83 = arith.constant 0 : index
    %c0_84 = arith.constant 0 : index
    %74 = vector.load %arg5[%c2_81, %c2_82, %c0_83, %c0_84] : memref<3x3x4x8xf32, #tpu.memory_space<vmem>>, vector<1x1x4x8xf32>
    %75 = vector.shape_cast %74 : vector<1x1x4x8xf32> to vector<4x8xf32>
    %c0_85 = arith.constant 0 : index
    %c0_86 = arith.constant 0 : index
    %c145 = arith.constant 145 : index
    %76 = vector.load %arg12[%c0_85, %c0_86, %c145] : memref<2x8x416xf32, #tpu.memory_space<vmem>>, vector<1x8x256xf32>
    %77 = vector.shape_cast %76 : vector<1x8x256xf32> to vector<8x256xf32>
    %cst_87 = arith.constant dense<0.000000e+00> : vector<4x256xf32>
    %78 = tpu.matmul %75, %77, %cst_87 {dimension_numbers = #tpu.dot_dimension_numbers<[1], [0], [0], [1], [0, 0, 1, 1], [], []>} : vector<4x8xf32>, vector<8x256xf32>, vector<4x256xf32> -> vector<4x256xf32>
    %79 = arith.addf %61, %78 : vector<4x256xf32>
    %80 = vector.broadcast %0 : vector<1x256xf32> to vector<4x256xf32>
    %81 = arith.mulf %80, %67 : vector<4x256xf32>
    %82 = arith.addf %73, %81 : vector<4x256xf32>
    %83 = vector.broadcast %1 : vector<1x256xf32> to vector<4x256xf32>
    %84 = arith.mulf %83, %79 : vector<4x256xf32>
    %85 = arith.addf %82, %84 : vector<4x256xf32>
    %cst_88 = arith.constant 0.000000e+00 : f32
    %86 = vector.broadcast %cst_88 : f32 to vector<4x256xf32>
    %cst_89 = arith.constant 0.000000e+00 : f32
    %87 = vector.broadcast %cst_89 : f32 to vector<4x256xf32>
    %cst_90 = arith.constant 0.000000e+00 : f32
    %88 = vector.broadcast %cst_90 : f32 to vector<4x256xf32>
    %c0_91 = arith.constant 0 : index
    %c0_92 = arith.constant 0 : index
    %c0_93 = arith.constant 0 : index
    %c0_94 = arith.constant 0 : index
    %89 = vector.load %arg5[%c0_91, %c0_92, %c0_93, %c0_94] : memref<3x3x4x8xf32, #tpu.memory_space<vmem>>, vector<1x1x4x8xf32>
    %90 = vector.shape_cast %89 : vector<1x1x4x8xf32> to vector<4x8xf32>
    %c1_95 = arith.constant 1 : index
    %c0_96 = arith.constant 0 : index
    %c111_97 = arith.constant 111 : index
    %91 = vector.load %arg12[%c1_95, %c0_96, %c111_97] : memref<2x8x416xf32, #tpu.memory_space<vmem>>, vector<1x8x256xf32>
    %92 = vector.shape_cast %91 : vector<1x8x256xf32> to vector<8x256xf32>
    %cst_98 = arith.constant dense<0.000000e+00> : vector<4x256xf32>
    %93 = tpu.matmul %90, %92, %cst_98 {dimension_numbers = #tpu.dot_dimension_numbers<[1], [0], [0], [1], [0, 0, 1, 1], [], []>} : vector<4x8xf32>, vector<8x256xf32>, vector<4x256xf32> -> vector<4x256xf32>
    %94 = arith.addf %86, %93 : vector<4x256xf32>
    %c0_99 = arith.constant 0 : index
    %c1_100 = arith.constant 1 : index
    %c0_101 = arith.constant 0 : index
    %c0_102 = arith.constant 0 : index
    %95 = vector.load %arg5[%c0_99, %c1_100, %c0_101, %c0_102] : memref<3x3x4x8xf32, #tpu.memory_space<vmem>>, vector<1x1x4x8xf32>
    %96 = vector.shape_cast %95 : vector<1x1x4x8xf32> to vector<4x8xf32>
    %c1_103 = arith.constant 1 : index
    %c0_104 = arith.constant 0 : index
    %c112_105 = arith.constant 112 : index
    %97 = vector.load %arg12[%c1_103, %c0_104, %c112_105] : memref<2x8x416xf32, #tpu.memory_space<vmem>>, vector<1x8x256xf32>
    %98 = vector.shape_cast %97 : vector<1x8x256xf32> to vector<8x256xf32>
    %cst_106 = arith.constant dense<0.000000e+00> : vector<4x256xf32>
    %99 = tpu.matmul %96, %98, %cst_106 {dimension_numbers = #tpu.dot_dimension_numbers<[1], [0], [0], [1], [0, 0, 1, 1], [], []>} : vector<4x8xf32>, vector<8x256xf32>, vector<4x256xf32> -> vector<4x256xf32>
    %100 = arith.addf %87, %99 : vector<4x256xf32>
    %c0_107 = arith.constant 0 : index
    %c2_108 = arith.constant 2 : index
    %c0_109 = arith.constant 0 : index
    %c0_110 = arith.constant 0 : index
    %101 = vector.load %arg5[%c0_107, %c2_108, %c0_109, %c0_110] : memref<3x3x4x8xf32, #tpu.memory_space<vmem>>, vector<1x1x4x8xf32>
    %102 = vector.shape_cast %101 : vector<1x1x4x8xf32> to vector<4x8xf32>
    %c1_111 = arith.constant 1 : index
    %c0_112 = arith.constant 0 : index
    %c113_113 = arith.constant 113 : index
    %103 = vector.load %arg12[%c1_111, %c0_112, %c113_113] : memref<2x8x416xf32, #tpu.memory_space<vmem>>, vector<1x8x256xf32>
    %104 = vector.shape_cast %103 : vector<1x8x256xf32> to vector<8x256xf32>
    %cst_114 = arith.constant dense<0.000000e+00> : vector<4x256xf32>
    %105 = tpu.matmul %102, %104, %cst_114 {dimension_numbers = #tpu.dot_dimension_numbers<[1], [0], [0], [1], [0, 0, 1, 1], [], []>} : vector<4x8xf32>, vector<8x256xf32>, vector<4x256xf32> -> vector<4x256xf32>
    %106 = arith.addf %88, %105 : vector<4x256xf32>
    %c1_115 = arith.constant 1 : index
    %c0_116 = arith.constant 0 : index
    %c0_117 = arith.constant 0 : index
    %c0_118 = arith.constant 0 : index
    %107 = vector.load %arg5[%c1_115, %c0_116, %c0_117, %c0_118] : memref<3x3x4x8xf32, #tpu.memory_space<vmem>>, vector<1x1x4x8xf32>
    %108 = vector.shape_cast %107 : vector<1x1x4x8xf32> to vector<4x8xf32>
    %c1_119 = arith.constant 1 : index
    %c0_120 = arith.constant 0 : index
    %c127_121 = arith.constant 127 : index
    %109 = vector.load %arg12[%c1_119, %c0_120, %c127_121] : memref<2x8x416xf32, #tpu.memory_space<vmem>>, vector<1x8x256xf32>
    %110 = vector.shape_cast %109 : vector<1x8x256xf32> to vector<8x256xf32>
    %cst_122 = arith.constant dense<0.000000e+00> : vector<4x256xf32>
    %111 = tpu.matmul %108, %110, %cst_122 {dimension_numbers = #tpu.dot_dimension_numbers<[1], [0], [0], [1], [0, 0, 1, 1], [], []>} : vector<4x8xf32>, vector<8x256xf32>, vector<4x256xf32> -> vector<4x256xf32>
    %112 = arith.addf %94, %111 : vector<4x256xf32>
    %c1_123 = arith.constant 1 : index
    %c1_124 = arith.constant 1 : index
    %c0_125 = arith.constant 0 : index
    %c0_126 = arith.constant 0 : index
    %113 = vector.load %arg5[%c1_123, %c1_124, %c0_125, %c0_126] : memref<3x3x4x8xf32, #tpu.memory_space<vmem>>, vector<1x1x4x8xf32>
    %114 = vector.shape_cast %113 : vector<1x1x4x8xf32> to vector<4x8xf32>
    %c1_127 = arith.constant 1 : index
    %c0_128 = arith.constant 0 : index
    %c128_129 = arith.constant 128 : index
    %115 = vector.load %arg12[%c1_127, %c0_128, %c128_129] : memref<2x8x416xf32, #tpu.memory_space<vmem>>, vector<1x8x256xf32>
    %116 = vector.shape_cast %115 : vector<1x8x256xf32> to vector<8x256xf32>
    %cst_130 = arith.constant dense<0.000000e+00> : vector<4x256xf32>
    %117 = tpu.matmul %114, %116, %cst_130 {dimension_numbers = #tpu.dot_dimension_numbers<[1], [0], [0], [1], [0, 0, 1, 1], [], []>} : vector<4x8xf32>, vector<8x256xf32>, vector<4x256xf32> -> vector<4x256xf32>
    %118 = arith.addf %100, %117 : vector<4x256xf32>
    %c1_131 = arith.constant 1 : index
    %c2_132 = arith.constant 2 : index
    %c0_133 = arith.constant 0 : index
    %c0_134 = arith.constant 0 : index
    %119 = vector.load %arg5[%c1_131, %c2_132, %c0_133, %c0_134] : memref<3x3x4x8xf32, #tpu.memory_space<vmem>>, vector<1x1x4x8xf32>
    %120 = vector.shape_cast %119 : vector<1x1x4x8xf32> to vector<4x8xf32>
    %c1_135 = arith.constant 1 : index
    %c0_136 = arith.constant 0 : index
    %c129_137 = arith.constant 129 : index
    %121 = vector.load %arg12[%c1_135, %c0_136, %c129_137] : memref<2x8x416xf32, #tpu.memory_space<vmem>>, vector<1x8x256xf32>
    %122 = vector.shape_cast %121 : vector<1x8x256xf32> to vector<8x256xf32>
    %cst_138 = arith.constant dense<0.000000e+00> : vector<4x256xf32>
    %123 = tpu.matmul %120, %122, %cst_138 {dimension_numbers = #tpu.dot_dimension_numbers<[1], [0], [0], [1], [0, 0, 1, 1], [], []>} : vector<4x8xf32>, vector<8x256xf32>, vector<4x256xf32> -> vector<4x256xf32>
    %124 = arith.addf %106, %123 : vector<4x256xf32>
    %c2_139 = arith.constant 2 : index
    %c0_140 = arith.constant 0 : index
    %c0_141 = arith.constant 0 : index
    %c0_142 = arith.constant 0 : index
    %125 = vector.load %arg5[%c2_139, %c0_140, %c0_141, %c0_142] : memref<3x3x4x8xf32, #tpu.memory_space<vmem>>, vector<1x1x4x8xf32>
    %126 = vector.shape_cast %125 : vector<1x1x4x8xf32> to vector<4x8xf32>
    %c1_143 = arith.constant 1 : index
    %c0_144 = arith.constant 0 : index
    %c143_145 = arith.constant 143 : index
    %127 = vector.load %arg12[%c1_143, %c0_144, %c143_145] : memref<2x8x416xf32, #tpu.memory_space<vmem>>, vector<1x8x256xf32>
    %128 = vector.shape_cast %127 : vector<1x8x256xf32> to vector<8x256xf32>
    %cst_146 = arith.constant dense<0.000000e+00> : vector<4x256xf32>
    %129 = tpu.matmul %126, %128, %cst_146 {dimension_numbers = #tpu.dot_dimension_numbers<[1], [0], [0], [1], [0, 0, 1, 1], [], []>} : vector<4x8xf32>, vector<8x256xf32>, vector<4x256xf32> -> vector<4x256xf32>
    %130 = arith.addf %112, %129 : vector<4x256xf32>
    %c2_147 = arith.constant 2 : index
    %c1_148 = arith.constant 1 : index
    %c0_149 = arith.constant 0 : index
    %c0_150 = arith.constant 0 : index
    %131 = vector.load %arg5[%c2_147, %c1_148, %c0_149, %c0_150] : memref<3x3x4x8xf32, #tpu.memory_space<vmem>>, vector<1x1x4x8xf32>
    %132 = vector.shape_cast %131 : vector<1x1x4x8xf32> to vector<4x8xf32>
    %c1_151 = arith.constant 1 : index
    %c0_152 = arith.constant 0 : index
    %c144_153 = arith.constant 144 : index
    %133 = vector.load %arg12[%c1_151, %c0_152, %c144_153] : memref<2x8x416xf32, #tpu.memory_space<vmem>>, vector<1x8x256xf32>
    %134 = vector.shape_cast %133 : vector<1x8x256xf32> to vector<8x256xf32>
    %cst_154 = arith.constant dense<0.000000e+00> : vector<4x256xf32>
    %135 = tpu.matmul %132, %134, %cst_154 {dimension_numbers = #tpu.dot_dimension_numbers<[1], [0], [0], [1], [0, 0, 1, 1], [], []>} : vector<4x8xf32>, vector<8x256xf32>, vector<4x256xf32> -> vector<4x256xf32>
    %136 = arith.addf %118, %135 : vector<4x256xf32>
    %c2_155 = arith.constant 2 : index
    %c2_156 = arith.constant 2 : index
    %c0_157 = arith.constant 0 : index
    %c0_158 = arith.constant 0 : index
    %137 = vector.load %arg5[%c2_155, %c2_156, %c0_157, %c0_158] : memref<3x3x4x8xf32, #tpu.memory_space<vmem>>, vector<1x1x4x8xf32>
    %138 = vector.shape_cast %137 : vector<1x1x4x8xf32> to vector<4x8xf32>
    %c1_159 = arith.constant 1 : index
    %c0_160 = arith.constant 0 : index
    %c145_161 = arith.constant 145 : index
    %139 = vector.load %arg12[%c1_159, %c0_160, %c145_161] : memref<2x8x416xf32, #tpu.memory_space<vmem>>, vector<1x8x256xf32>
    %140 = vector.shape_cast %139 : vector<1x8x256xf32> to vector<8x256xf32>
    %cst_162 = arith.constant dense<0.000000e+00> : vector<4x256xf32>
    %141 = tpu.matmul %138, %140, %cst_162 {dimension_numbers = #tpu.dot_dimension_numbers<[1], [0], [0], [1], [0, 0, 1, 1], [], []>} : vector<4x8xf32>, vector<8x256xf32>, vector<4x256xf32> -> vector<4x256xf32>
    %142 = arith.addf %124, %141 : vector<4x256xf32>
    %143 = vector.broadcast %0 : vector<1x256xf32> to vector<4x256xf32>
    %144 = arith.mulf %143, %130 : vector<4x256xf32>
    %145 = arith.addf %136, %144 : vector<4x256xf32>
    %146 = vector.broadcast %1 : vector<1x256xf32> to vector<4x256xf32>
    %147 = arith.mulf %146, %142 : vector<4x256xf32>
    %148 = arith.addf %145, %147 : vector<4x256xf32>
    %cst_163 = arith.constant 0.000000e+00 : f32
    %149 = vector.broadcast %cst_163 : f32 to vector<2x4x416xf32>
    %c0_164 = arith.constant 0 : index
    %c0_165 = arith.constant 0 : index
    %c0_166 = arith.constant 0 : index
    %150 = vector.load %arg13[%c0_164, %c0_165, %c0_166] : memref<2x4x416xf32, #tpu.memory_space<vmem>>, vector<2x4x416xf32>
    tpu.vector_store %arg13[%c0_164, %c0_165, %c0_166], %149 {strides = array<i32>} : memref<2x4x416xf32, #tpu.memory_space<vmem>>, vector<2x4x416xf32>,
    %cst_167 = arith.constant dense<0.000000e+00> : vector<4xf32>
    %151 = vector.multi_reduction <add>, %85, %cst_167 [1] : vector<4x256xf32> to vector<4xf32>
    %152 = vector.shape_cast %151 : vector<4xf32> to vector<4x1xf32>
    %cst_168 = arith.constant 0.000000e+00 : f32
    %153 = vector.broadcast %cst_168 : f32 to vector<4x1xf32>
    %154 = arith.addf %153, %152 : vector<4x1xf32>
    %cst_169 = arith.constant dense<0.000000e+00> : vector<4xf32>
    %155 = vector.multi_reduction <add>, %148, %cst_169 [1] : vector<4x256xf32> to vector<4xf32>
    %156 = vector.shape_cast %155 : vector<4xf32> to vector<4x1xf32>
    %157 = arith.addf %154, %156 : vector<4x1xf32>
    %158 = arith.mulf %85, %85 : vector<4x256xf32>
    %cst_170 = arith.constant dense<0.000000e+00> : vector<4xf32>
    %159 = vector.multi_reduction <add>, %158, %cst_170 [1] : vector<4x256xf32> to vector<4xf32>
    %160 = vector.shape_cast %159 : vector<4xf32> to vector<4x1xf32>
    %cst_171 = arith.constant 0.000000e+00 : f32
    %161 = vector.broadcast %cst_171 : f32 to vector<4x1xf32>
    %162 = arith.addf %161, %160 : vector<4x1xf32>
    %163 = arith.mulf %148, %148 : vector<4x256xf32>
    %cst_172 = arith.constant dense<0.000000e+00> : vector<4xf32>
    %164 = vector.multi_reduction <add>, %163, %cst_172 [1] : vector<4x256xf32> to vector<4xf32>
    %165 = vector.shape_cast %164 : vector<4xf32> to vector<4x1xf32>
    %166 = arith.addf %162, %165 : vector<4x1xf32>
    %cst_173 = arith.constant 5.120000e+02 : f32
    %167 = vector.broadcast %cst_173 : f32 to vector<4x1xf32>
    %168 = arith.divf %157, %167 : vector<4x1xf32>
    %cst_174 = arith.constant 5.120000e+02 : f32
    %169 = vector.broadcast %cst_174 : f32 to vector<4x1xf32>
    %170 = arith.divf %166, %169 : vector<4x1xf32>
    %171 = arith.mulf %168, %168 : vector<4x1xf32>
    %172 = arith.subf %170, %171 : vector<4x1xf32>
    %cst_175 = arith.constant 9.99999974E-6 : f32
    %173 = vector.broadcast %cst_175 : f32 to vector<4x1xf32>
    %174 = arith.addf %172, %173 : vector<4x1xf32>
    %175 = math.rsqrt %174 : vector<4x1xf32>
    %c0_176 = arith.constant 0 : index
    %c0_177 = arith.constant 0 : index
    %176 = vector.load %arg6[%c0_176, %c0_177] : memref<4x1xf32, #tpu.memory_space<vmem>>, vector<4x1xf32>
    %177 = arith.mulf %175, %176 : vector<4x1xf32>
    %c0_178 = arith.constant 0 : index
    %c0_179 = arith.constant 0 : index
    %178 = vector.load %arg7[%c0_178, %c0_179] : memref<4x1xf32, #tpu.memory_space<vmem>>, vector<4x1xf32>
    %179 = arith.mulf %168, %177 : vector<4x1xf32>
    %180 = arith.subf %178, %179 : vector<4x1xf32>
    %181 = vector.broadcast %177 : vector<4x1xf32> to vector<4x256xf32>
    %182 = arith.mulf %85, %181 : vector<4x256xf32>
    %183 = vector.broadcast %180 : vector<4x1xf32> to vector<4x256xf32>
    %184 = arith.addf %182, %183 : vector<4x256xf32>
    %cst_180 = arith.constant 0.000000e+00 : f32
    %185 = vector.broadcast %cst_180 : f32 to vector<4x256xf32>
    %186 = arith.maximumf %184, %185 : vector<4x256xf32>
    %c0_181 = arith.constant 0 : index
    %c0_182 = arith.constant 0 : index
    %c128_183 = arith.constant 128 : index
    %187 = vector.load %arg13[%c0_181, %c0_182, %c128_183] : memref<2x4x416xf32, #tpu.memory_space<vmem>>, vector<1x4x256xf32>
    %188 = vector.shape_cast %187 : vector<1x4x256xf32> to vector<4x256xf32>
    %189 = vector.shape_cast %186 : vector<4x256xf32> to vector<1x4x256xf32>
    tpu.vector_store %arg13[%c0_181, %c0_182, %c128_183], %189 {strides = array<i32>} : memref<2x4x416xf32, #tpu.memory_space<vmem>>, vector<1x4x256xf32>,
    %190 = vector.broadcast %177 : vector<4x1xf32> to vector<4x256xf32>
    %191 = arith.mulf %148, %190 : vector<4x256xf32>
    %192 = vector.broadcast %180 : vector<4x1xf32> to vector<4x256xf32>
    %193 = arith.addf %191, %192 : vector<4x256xf32>
    %cst_184 = arith.constant 0.000000e+00 : f32
    %194 = vector.broadcast %cst_184 : f32 to vector<4x256xf32>
    %195 = arith.maximumf %193, %194 : vector<4x256xf32>
    %c1_185 = arith.constant 1 : index
    %c0_186 = arith.constant 0 : index
    %c128_187 = arith.constant 128 : index
    %196 = vector.load %arg13[%c1_185, %c0_186, %c128_187] : memref<2x4x416xf32, #tpu.memory_space<vmem>>, vector<1x4x256xf32>
    %197 = vector.shape_cast %196 : vector<1x4x256xf32> to vector<4x256xf32>
    %198 = vector.shape_cast %195 : vector<4x256xf32> to vector<1x4x256xf32>
    tpu.vector_store %arg13[%c1_185, %c0_186, %c128_187], %198 {strides = array<i32>} : memref<2x4x416xf32, #tpu.memory_space<vmem>>, vector<1x4x256xf32>,
    %cst_188 = arith.constant 0.000000e+00 : f32
    %199 = vector.broadcast %cst_188 : f32 to vector<4x256xf32>
    %cst_189 = arith.constant 0.000000e+00 : f32
    %200 = vector.broadcast %cst_189 : f32 to vector<4x256xf32>
    %cst_190 = arith.constant 0.000000e+00 : f32
    %201 = vector.broadcast %cst_190 : f32 to vector<4x256xf32>
    %c0_191 = arith.constant 0 : index
    %c0_192 = arith.constant 0 : index
    %c0_193 = arith.constant 0 : index
    %c0_194 = arith.constant 0 : index
    %202 = vector.load %arg8[%c0_191, %c0_192, %c0_193, %c0_194] : memref<3x3x4x4xf32, #tpu.memory_space<vmem>>, vector<1x1x4x4xf32>
    %203 = vector.shape_cast %202 : vector<1x1x4x4xf32> to vector<4x4xf32>
    %c0_195 = arith.constant 0 : index
    %c0_196 = arith.constant 0 : index
    %c111_197 = arith.constant 111 : index
    %204 = vector.load %arg13[%c0_195, %c0_196, %c111_197] : memref<2x4x416xf32, #tpu.memory_space<vmem>>, vector<1x4x256xf32>
    %205 = vector.shape_cast %204 : vector<1x4x256xf32> to vector<4x256xf32>
    %cst_198 = arith.constant dense<0.000000e+00> : vector<4x256xf32>
    %206 = tpu.matmul %203, %205, %cst_198 {dimension_numbers = #tpu.dot_dimension_numbers<[1], [0], [0], [1], [0, 0, 1, 1], [], []>} : vector<4x4xf32>, vector<4x256xf32>, vector<4x256xf32> -> vector<4x256xf32>
    %207 = arith.addf %199, %206 : vector<4x256xf32>
    %c0_199 = arith.constant 0 : index
    %c1_200 = arith.constant 1 : index
    %c0_201 = arith.constant 0 : index
    %c0_202 = arith.constant 0 : index
    %208 = vector.load %arg8[%c0_199, %c1_200, %c0_201, %c0_202] : memref<3x3x4x4xf32, #tpu.memory_space<vmem>>, vector<1x1x4x4xf32>
    %209 = vector.shape_cast %208 : vector<1x1x4x4xf32> to vector<4x4xf32>
    %c0_203 = arith.constant 0 : index
    %c0_204 = arith.constant 0 : index
    %c112_205 = arith.constant 112 : index
    %210 = vector.load %arg13[%c0_203, %c0_204, %c112_205] : memref<2x4x416xf32, #tpu.memory_space<vmem>>, vector<1x4x256xf32>
    %211 = vector.shape_cast %210 : vector<1x4x256xf32> to vector<4x256xf32>
    %cst_206 = arith.constant dense<0.000000e+00> : vector<4x256xf32>
    %212 = tpu.matmul %209, %211, %cst_206 {dimension_numbers = #tpu.dot_dimension_numbers<[1], [0], [0], [1], [0, 0, 1, 1], [], []>} : vector<4x4xf32>, vector<4x256xf32>, vector<4x256xf32> -> vector<4x256xf32>
    %213 = arith.addf %200, %212 : vector<4x256xf32>
    %c0_207 = arith.constant 0 : index
    %c2_208 = arith.constant 2 : index
    %c0_209 = arith.constant 0 : index
    %c0_210 = arith.constant 0 : index
    %214 = vector.load %arg8[%c0_207, %c2_208, %c0_209, %c0_210] : memref<3x3x4x4xf32, #tpu.memory_space<vmem>>, vector<1x1x4x4xf32>
    %215 = vector.shape_cast %214 : vector<1x1x4x4xf32> to vector<4x4xf32>
    %c0_211 = arith.constant 0 : index
    %c0_212 = arith.constant 0 : index
    %c113_213 = arith.constant 113 : index
    %216 = vector.load %arg13[%c0_211, %c0_212, %c113_213] : memref<2x4x416xf32, #tpu.memory_space<vmem>>, vector<1x4x256xf32>
    %217 = vector.shape_cast %216 : vector<1x4x256xf32> to vector<4x256xf32>
    %cst_214 = arith.constant dense<0.000000e+00> : vector<4x256xf32>
    %218 = tpu.matmul %215, %217, %cst_214 {dimension_numbers = #tpu.dot_dimension_numbers<[1], [0], [0], [1], [0, 0, 1, 1], [], []>} : vector<4x4xf32>, vector<4x256xf32>, vector<4x256xf32> -> vector<4x256xf32>
    %219 = arith.addf %201, %218 : vector<4x256xf32>
    %c1_215 = arith.constant 1 : index
    %c0_216 = arith.constant 0 : index
    %c0_217 = arith.constant 0 : index
    %c0_218 = arith.constant 0 : index
    %220 = vector.load %arg8[%c1_215, %c0_216, %c0_217, %c0_218] : memref<3x3x4x4xf32, #tpu.memory_space<vmem>>, vector<1x1x4x4xf32>
    %221 = vector.shape_cast %220 : vector<1x1x4x4xf32> to vector<4x4xf32>
    %c0_219 = arith.constant 0 : index
    %c0_220 = arith.constant 0 : index
    %c127_221 = arith.constant 127 : index
    %222 = vector.load %arg13[%c0_219, %c0_220, %c127_221] : memref<2x4x416xf32, #tpu.memory_space<vmem>>, vector<1x4x256xf32>
    %223 = vector.shape_cast %222 : vector<1x4x256xf32> to vector<4x256xf32>
    %cst_222 = arith.constant dense<0.000000e+00> : vector<4x256xf32>
    %224 = tpu.matmul %221, %223, %cst_222 {dimension_numbers = #tpu.dot_dimension_numbers<[1], [0], [0], [1], [0, 0, 1, 1], [], []>} : vector<4x4xf32>, vector<4x256xf32>, vector<4x256xf32> -> vector<4x256xf32>
    %225 = arith.addf %207, %224 : vector<4x256xf32>
    %c1_223 = arith.constant 1 : index
    %c1_224 = arith.constant 1 : index
    %c0_225 = arith.constant 0 : index
    %c0_226 = arith.constant 0 : index
    %226 = vector.load %arg8[%c1_223, %c1_224, %c0_225, %c0_226] : memref<3x3x4x4xf32, #tpu.memory_space<vmem>>, vector<1x1x4x4xf32>
    %227 = vector.shape_cast %226 : vector<1x1x4x4xf32> to vector<4x4xf32>
    %c0_227 = arith.constant 0 : index
    %c0_228 = arith.constant 0 : index
    %c128_229 = arith.constant 128 : index
    %228 = vector.load %arg13[%c0_227, %c0_228, %c128_229] : memref<2x4x416xf32, #tpu.memory_space<vmem>>, vector<1x4x256xf32>
    %229 = vector.shape_cast %228 : vector<1x4x256xf32> to vector<4x256xf32>
    %cst_230 = arith.constant dense<0.000000e+00> : vector<4x256xf32>
    %230 = tpu.matmul %227, %229, %cst_230 {dimension_numbers = #tpu.dot_dimension_numbers<[1], [0], [0], [1], [0, 0, 1, 1], [], []>} : vector<4x4xf32>, vector<4x256xf32>, vector<4x256xf32> -> vector<4x256xf32>
    %231 = arith.addf %213, %230 : vector<4x256xf32>
    %c1_231 = arith.constant 1 : index
    %c2_232 = arith.constant 2 : index
    %c0_233 = arith.constant 0 : index
    %c0_234 = arith.constant 0 : index
    %232 = vector.load %arg8[%c1_231, %c2_232, %c0_233, %c0_234] : memref<3x3x4x4xf32, #tpu.memory_space<vmem>>, vector<1x1x4x4xf32>
    %233 = vector.shape_cast %232 : vector<1x1x4x4xf32> to vector<4x4xf32>
    %c0_235 = arith.constant 0 : index
    %c0_236 = arith.constant 0 : index
    %c129_237 = arith.constant 129 : index
    %234 = vector.load %arg13[%c0_235, %c0_236, %c129_237] : memref<2x4x416xf32, #tpu.memory_space<vmem>>, vector<1x4x256xf32>
    %235 = vector.shape_cast %234 : vector<1x4x256xf32> to vector<4x256xf32>
    %cst_238 = arith.constant dense<0.000000e+00> : vector<4x256xf32>
    %236 = tpu.matmul %233, %235, %cst_238 {dimension_numbers = #tpu.dot_dimension_numbers<[1], [0], [0], [1], [0, 0, 1, 1], [], []>} : vector<4x4xf32>, vector<4x256xf32>, vector<4x256xf32> -> vector<4x256xf32>
    %237 = arith.addf %219, %236 : vector<4x256xf32>
    %c2_239 = arith.constant 2 : index
    %c0_240 = arith.constant 0 : index
    %c0_241 = arith.constant 0 : index
    %c0_242 = arith.constant 0 : index
    %238 = vector.load %arg8[%c2_239, %c0_240, %c0_241, %c0_242] : memref<3x3x4x4xf32, #tpu.memory_space<vmem>>, vector<1x1x4x4xf32>
    %239 = vector.shape_cast %238 : vector<1x1x4x4xf32> to vector<4x4xf32>
    %c0_243 = arith.constant 0 : index
    %c0_244 = arith.constant 0 : index
    %c143_245 = arith.constant 143 : index
    %240 = vector.load %arg13[%c0_243, %c0_244, %c143_245] : memref<2x4x416xf32, #tpu.memory_space<vmem>>, vector<1x4x256xf32>
    %241 = vector.shape_cast %240 : vector<1x4x256xf32> to vector<4x256xf32>
    %cst_246 = arith.constant dense<0.000000e+00> : vector<4x256xf32>
    %242 = tpu.matmul %239, %241, %cst_246 {dimension_numbers = #tpu.dot_dimension_numbers<[1], [0], [0], [1], [0, 0, 1, 1], [], []>} : vector<4x4xf32>, vector<4x256xf32>, vector<4x256xf32> -> vector<4x256xf32>
    %243 = arith.addf %225, %242 : vector<4x256xf32>
    %c2_247 = arith.constant 2 : index
    %c1_248 = arith.constant 1 : index
    %c0_249 = arith.constant 0 : index
    %c0_250 = arith.constant 0 : index
    %244 = vector.load %arg8[%c2_247, %c1_248, %c0_249, %c0_250] : memref<3x3x4x4xf32, #tpu.memory_space<vmem>>, vector<1x1x4x4xf32>
    %245 = vector.shape_cast %244 : vector<1x1x4x4xf32> to vector<4x4xf32>
    %c0_251 = arith.constant 0 : index
    %c0_252 = arith.constant 0 : index
    %c144_253 = arith.constant 144 : index
    %246 = vector.load %arg13[%c0_251, %c0_252, %c144_253] : memref<2x4x416xf32, #tpu.memory_space<vmem>>, vector<1x4x256xf32>
    %247 = vector.shape_cast %246 : vector<1x4x256xf32> to vector<4x256xf32>
    %cst_254 = arith.constant dense<0.000000e+00> : vector<4x256xf32>
    %248 = tpu.matmul %245, %247, %cst_254 {dimension_numbers = #tpu.dot_dimension_numbers<[1], [0], [0], [1], [0, 0, 1, 1], [], []>} : vector<4x4xf32>, vector<4x256xf32>, vector<4x256xf32> -> vector<4x256xf32>
    %249 = arith.addf %231, %248 : vector<4x256xf32>
    %c2_255 = arith.constant 2 : index
    %c2_256 = arith.constant 2 : index
    %c0_257 = arith.constant 0 : index
    %c0_258 = arith.constant 0 : index
    %250 = vector.load %arg8[%c2_255, %c2_256, %c0_257, %c0_258] : memref<3x3x4x4xf32, #tpu.memory_space<vmem>>, vector<1x1x4x4xf32>
    %251 = vector.shape_cast %250 : vector<1x1x4x4xf32> to vector<4x4xf32>
    %c0_259 = arith.constant 0 : index
    %c0_260 = arith.constant 0 : index
    %c145_261 = arith.constant 145 : index
    %252 = vector.load %arg13[%c0_259, %c0_260, %c145_261] : memref<2x4x416xf32, #tpu.memory_space<vmem>>, vector<1x4x256xf32>
    %253 = vector.shape_cast %252 : vector<1x4x256xf32> to vector<4x256xf32>
    %cst_262 = arith.constant dense<0.000000e+00> : vector<4x256xf32>
    %254 = tpu.matmul %251, %253, %cst_262 {dimension_numbers = #tpu.dot_dimension_numbers<[1], [0], [0], [1], [0, 0, 1, 1], [], []>} : vector<4x4xf32>, vector<4x256xf32>, vector<4x256xf32> -> vector<4x256xf32>
    %255 = arith.addf %237, %254 : vector<4x256xf32>
    %256 = vector.broadcast %0 : vector<1x256xf32> to vector<4x256xf32>
    %257 = arith.mulf %256, %243 : vector<4x256xf32>
    %258 = arith.addf %249, %257 : vector<4x256xf32>
    %259 = vector.broadcast %1 : vector<1x256xf32> to vector<4x256xf32>
    %260 = arith.mulf %259, %255 : vector<4x256xf32>
    %261 = arith.addf %258, %260 : vector<4x256xf32>
    %cst_263 = arith.constant 0.000000e+00 : f32
    %262 = vector.broadcast %cst_263 : f32 to vector<4x256xf32>
    %cst_264 = arith.constant 0.000000e+00 : f32
    %263 = vector.broadcast %cst_264 : f32 to vector<4x256xf32>
    %cst_265 = arith.constant 0.000000e+00 : f32
    %264 = vector.broadcast %cst_265 : f32 to vector<4x256xf32>
    %c0_266 = arith.constant 0 : index
    %c0_267 = arith.constant 0 : index
    %c0_268 = arith.constant 0 : index
    %c0_269 = arith.constant 0 : index
    %265 = vector.load %arg8[%c0_266, %c0_267, %c0_268, %c0_269] : memref<3x3x4x4xf32, #tpu.memory_space<vmem>>, vector<1x1x4x4xf32>
    %266 = vector.shape_cast %265 : vector<1x1x4x4xf32> to vector<4x4xf32>
    %c1_270 = arith.constant 1 : index
    %c0_271 = arith.constant 0 : index
    %c111_272 = arith.constant 111 : index
    %267 = vector.load %arg13[%c1_270, %c0_271, %c111_272] : memref<2x4x416xf32, #tpu.memory_space<vmem>>, vector<1x4x256xf32>
    %268 = vector.shape_cast %267 : vector<1x4x256xf32> to vector<4x256xf32>
    %cst_273 = arith.constant dense<0.000000e+00> : vector<4x256xf32>
    %269 = tpu.matmul %266, %268, %cst_273 {dimension_numbers = #tpu.dot_dimension_numbers<[1], [0], [0], [1], [0, 0, 1, 1], [], []>} : vector<4x4xf32>, vector<4x256xf32>, vector<4x256xf32> -> vector<4x256xf32>
    %270 = arith.addf %262, %269 : vector<4x256xf32>
    %c0_274 = arith.constant 0 : index
    %c1_275 = arith.constant 1 : index
    %c0_276 = arith.constant 0 : index
    %c0_277 = arith.constant 0 : index
    %271 = vector.load %arg8[%c0_274, %c1_275, %c0_276, %c0_277] : memref<3x3x4x4xf32, #tpu.memory_space<vmem>>, vector<1x1x4x4xf32>
    %272 = vector.shape_cast %271 : vector<1x1x4x4xf32> to vector<4x4xf32>
    %c1_278 = arith.constant 1 : index
    %c0_279 = arith.constant 0 : index
    %c112_280 = arith.constant 112 : index
    %273 = vector.load %arg13[%c1_278, %c0_279, %c112_280] : memref<2x4x416xf32, #tpu.memory_space<vmem>>, vector<1x4x256xf32>
    %274 = vector.shape_cast %273 : vector<1x4x256xf32> to vector<4x256xf32>
    %cst_281 = arith.constant dense<0.000000e+00> : vector<4x256xf32>
    %275 = tpu.matmul %272, %274, %cst_281 {dimension_numbers = #tpu.dot_dimension_numbers<[1], [0], [0], [1], [0, 0, 1, 1], [], []>} : vector<4x4xf32>, vector<4x256xf32>, vector<4x256xf32> -> vector<4x256xf32>
    %276 = arith.addf %263, %275 : vector<4x256xf32>
    %c0_282 = arith.constant 0 : index
    %c2_283 = arith.constant 2 : index
    %c0_284 = arith.constant 0 : index
    %c0_285 = arith.constant 0 : index
    %277 = vector.load %arg8[%c0_282, %c2_283, %c0_284, %c0_285] : memref<3x3x4x4xf32, #tpu.memory_space<vmem>>, vector<1x1x4x4xf32>
    %278 = vector.shape_cast %277 : vector<1x1x4x4xf32> to vector<4x4xf32>
    %c1_286 = arith.constant 1 : index
    %c0_287 = arith.constant 0 : index
    %c113_288 = arith.constant 113 : index
    %279 = vector.load %arg13[%c1_286, %c0_287, %c113_288] : memref<2x4x416xf32, #tpu.memory_space<vmem>>, vector<1x4x256xf32>
    %280 = vector.shape_cast %279 : vector<1x4x256xf32> to vector<4x256xf32>
    %cst_289 = arith.constant dense<0.000000e+00> : vector<4x256xf32>
    %281 = tpu.matmul %278, %280, %cst_289 {dimension_numbers = #tpu.dot_dimension_numbers<[1], [0], [0], [1], [0, 0, 1, 1], [], []>} : vector<4x4xf32>, vector<4x256xf32>, vector<4x256xf32> -> vector<4x256xf32>
    %282 = arith.addf %264, %281 : vector<4x256xf32>
    %c1_290 = arith.constant 1 : index
    %c0_291 = arith.constant 0 : index
    %c0_292 = arith.constant 0 : index
    %c0_293 = arith.constant 0 : index
    %283 = vector.load %arg8[%c1_290, %c0_291, %c0_292, %c0_293] : memref<3x3x4x4xf32, #tpu.memory_space<vmem>>, vector<1x1x4x4xf32>
    %284 = vector.shape_cast %283 : vector<1x1x4x4xf32> to vector<4x4xf32>
    %c1_294 = arith.constant 1 : index
    %c0_295 = arith.constant 0 : index
    %c127_296 = arith.constant 127 : index
    %285 = vector.load %arg13[%c1_294, %c0_295, %c127_296] : memref<2x4x416xf32, #tpu.memory_space<vmem>>, vector<1x4x256xf32>
    %286 = vector.shape_cast %285 : vector<1x4x256xf32> to vector<4x256xf32>
    %cst_297 = arith.constant dense<0.000000e+00> : vector<4x256xf32>
    %287 = tpu.matmul %284, %286, %cst_297 {dimension_numbers = #tpu.dot_dimension_numbers<[1], [0], [0], [1], [0, 0, 1, 1], [], []>} : vector<4x4xf32>, vector<4x256xf32>, vector<4x256xf32> -> vector<4x256xf32>
    %288 = arith.addf %270, %287 : vector<4x256xf32>
    %c1_298 = arith.constant 1 : index
    %c1_299 = arith.constant 1 : index
    %c0_300 = arith.constant 0 : index
    %c0_301 = arith.constant 0 : index
    %289 = vector.load %arg8[%c1_298, %c1_299, %c0_300, %c0_301] : memref<3x3x4x4xf32, #tpu.memory_space<vmem>>, vector<1x1x4x4xf32>
    %290 = vector.shape_cast %289 : vector<1x1x4x4xf32> to vector<4x4xf32>
    %c1_302 = arith.constant 1 : index
    %c0_303 = arith.constant 0 : index
    %c128_304 = arith.constant 128 : index
    %291 = vector.load %arg13[%c1_302, %c0_303, %c128_304] : memref<2x4x416xf32, #tpu.memory_space<vmem>>, vector<1x4x256xf32>
    %292 = vector.shape_cast %291 : vector<1x4x256xf32> to vector<4x256xf32>
    %cst_305 = arith.constant dense<0.000000e+00> : vector<4x256xf32>
    %293 = tpu.matmul %290, %292, %cst_305 {dimension_numbers = #tpu.dot_dimension_numbers<[1], [0], [0], [1], [0, 0, 1, 1], [], []>} : vector<4x4xf32>, vector<4x256xf32>, vector<4x256xf32> -> vector<4x256xf32>
    %294 = arith.addf %276, %293 : vector<4x256xf32>
    %c1_306 = arith.constant 1 : index
    %c2_307 = arith.constant 2 : index
    %c0_308 = arith.constant 0 : index
    %c0_309 = arith.constant 0 : index
    %295 = vector.load %arg8[%c1_306, %c2_307, %c0_308, %c0_309] : memref<3x3x4x4xf32, #tpu.memory_space<vmem>>, vector<1x1x4x4xf32>
    %296 = vector.shape_cast %295 : vector<1x1x4x4xf32> to vector<4x4xf32>
    %c1_310 = arith.constant 1 : index
    %c0_311 = arith.constant 0 : index
    %c129_312 = arith.constant 129 : index
    %297 = vector.load %arg13[%c1_310, %c0_311, %c129_312] : memref<2x4x416xf32, #tpu.memory_space<vmem>>, vector<1x4x256xf32>
    %298 = vector.shape_cast %297 : vector<1x4x256xf32> to vector<4x256xf32>
    %cst_313 = arith.constant dense<0.000000e+00> : vector<4x256xf32>
    %299 = tpu.matmul %296, %298, %cst_313 {dimension_numbers = #tpu.dot_dimension_numbers<[1], [0], [0], [1], [0, 0, 1, 1], [], []>} : vector<4x4xf32>, vector<4x256xf32>, vector<4x256xf32> -> vector<4x256xf32>
    %300 = arith.addf %282, %299 : vector<4x256xf32>
    %c2_314 = arith.constant 2 : index
    %c0_315 = arith.constant 0 : index
    %c0_316 = arith.constant 0 : index
    %c0_317 = arith.constant 0 : index
    %301 = vector.load %arg8[%c2_314, %c0_315, %c0_316, %c0_317] : memref<3x3x4x4xf32, #tpu.memory_space<vmem>>, vector<1x1x4x4xf32>
    %302 = vector.shape_cast %301 : vector<1x1x4x4xf32> to vector<4x4xf32>
    %c1_318 = arith.constant 1 : index
    %c0_319 = arith.constant 0 : index
    %c143_320 = arith.constant 143 : index
    %303 = vector.load %arg13[%c1_318, %c0_319, %c143_320] : memref<2x4x416xf32, #tpu.memory_space<vmem>>, vector<1x4x256xf32>
    %304 = vector.shape_cast %303 : vector<1x4x256xf32> to vector<4x256xf32>
    %cst_321 = arith.constant dense<0.000000e+00> : vector<4x256xf32>
    %305 = tpu.matmul %302, %304, %cst_321 {dimension_numbers = #tpu.dot_dimension_numbers<[1], [0], [0], [1], [0, 0, 1, 1], [], []>} : vector<4x4xf32>, vector<4x256xf32>, vector<4x256xf32> -> vector<4x256xf32>
    %306 = arith.addf %288, %305 : vector<4x256xf32>
    %c2_322 = arith.constant 2 : index
    %c1_323 = arith.constant 1 : index
    %c0_324 = arith.constant 0 : index
    %c0_325 = arith.constant 0 : index
    %307 = vector.load %arg8[%c2_322, %c1_323, %c0_324, %c0_325] : memref<3x3x4x4xf32, #tpu.memory_space<vmem>>, vector<1x1x4x4xf32>
    %308 = vector.shape_cast %307 : vector<1x1x4x4xf32> to vector<4x4xf32>
    %c1_326 = arith.constant 1 : index
    %c0_327 = arith.constant 0 : index
    %c144_328 = arith.constant 144 : index
    %309 = vector.load %arg13[%c1_326, %c0_327, %c144_328] : memref<2x4x416xf32, #tpu.memory_space<vmem>>, vector<1x4x256xf32>
    %310 = vector.shape_cast %309 : vector<1x4x256xf32> to vector<4x256xf32>
    %cst_329 = arith.constant dense<0.000000e+00> : vector<4x256xf32>
    %311 = tpu.matmul %308, %310, %cst_329 {dimension_numbers = #tpu.dot_dimension_numbers<[1], [0], [0], [1], [0, 0, 1, 1], [], []>} : vector<4x4xf32>, vector<4x256xf32>, vector<4x256xf32> -> vector<4x256xf32>
    %312 = arith.addf %294, %311 : vector<4x256xf32>
    %c2_330 = arith.constant 2 : index
    %c2_331 = arith.constant 2 : index
    %c0_332 = arith.constant 0 : index
    %c0_333 = arith.constant 0 : index
    %313 = vector.load %arg8[%c2_330, %c2_331, %c0_332, %c0_333] : memref<3x3x4x4xf32, #tpu.memory_space<vmem>>, vector<1x1x4x4xf32>
    %314 = vector.shape_cast %313 : vector<1x1x4x4xf32> to vector<4x4xf32>
    %c1_334 = arith.constant 1 : index
    %c0_335 = arith.constant 0 : index
    %c145_336 = arith.constant 145 : index
    %315 = vector.load %arg13[%c1_334, %c0_335, %c145_336] : memref<2x4x416xf32, #tpu.memory_space<vmem>>, vector<1x4x256xf32>
    %316 = vector.shape_cast %315 : vector<1x4x256xf32> to vector<4x256xf32>
    %cst_337 = arith.constant dense<0.000000e+00> : vector<4x256xf32>
    %317 = tpu.matmul %314, %316, %cst_337 {dimension_numbers = #tpu.dot_dimension_numbers<[1], [0], [0], [1], [0, 0, 1, 1], [], []>} : vector<4x4xf32>, vector<4x256xf32>, vector<4x256xf32> -> vector<4x256xf32>
    %318 = arith.addf %300, %317 : vector<4x256xf32>
    %319 = vector.broadcast %0 : vector<1x256xf32> to vector<4x256xf32>
    %320 = arith.mulf %319, %306 : vector<4x256xf32>
    %321 = arith.addf %312, %320 : vector<4x256xf32>
    %322 = vector.broadcast %1 : vector<1x256xf32> to vector<4x256xf32>
    %323 = arith.mulf %322, %318 : vector<4x256xf32>
    %324 = arith.addf %321, %323 : vector<4x256xf32>
    %cst_338 = arith.constant dense<0.000000e+00> : vector<4xf32>
    %325 = vector.multi_reduction <add>, %261, %cst_338 [1] : vector<4x256xf32> to vector<4xf32>
    %326 = vector.shape_cast %325 : vector<4xf32> to vector<4x1xf32>
    %cst_339 = arith.constant 0.000000e+00 : f32
    %327 = vector.broadcast %cst_339 : f32 to vector<4x1xf32>
    %328 = arith.addf %327, %326 : vector<4x1xf32>
    %cst_340 = arith.constant dense<0.000000e+00> : vector<4xf32>
    %329 = vector.multi_reduction <add>, %324, %cst_340 [1] : vector<4x256xf32> to vector<4xf32>
    %330 = vector.shape_cast %329 : vector<4xf32> to vector<4x1xf32>
    %331 = arith.addf %328, %330 : vector<4x1xf32>
    %332 = arith.mulf %261, %261 : vector<4x256xf32>
    %cst_341 = arith.constant dense<0.000000e+00> : vector<4xf32>
    %333 = vector.multi_reduction <add>, %332, %cst_341 [1] : vector<4x256xf32> to vector<4xf32>
    %334 = vector.shape_cast %333 : vector<4xf32> to vector<4x1xf32>
    %cst_342 = arith.constant 0.000000e+00 : f32
    %335 = vector.broadcast %cst_342 : f32 to vector<4x1xf32>
    %336 = arith.addf %335, %334 : vector<4x1xf32>
    %337 = arith.mulf %324, %324 : vector<4x256xf32>
    %cst_343 = arith.constant dense<0.000000e+00> : vector<4xf32>
    %338 = vector.multi_reduction <add>, %337, %cst_343 [1] : vector<4x256xf32> to vector<4xf32>
    %339 = vector.shape_cast %338 : vector<4xf32> to vector<4x1xf32>
    %340 = arith.addf %336, %339 : vector<4x1xf32>
    %cst_344 = arith.constant 5.120000e+02 : f32
    %341 = vector.broadcast %cst_344 : f32 to vector<4x1xf32>
    %342 = arith.divf %331, %341 : vector<4x1xf32>
    %cst_345 = arith.constant 5.120000e+02 : f32
    %343 = vector.broadcast %cst_345 : f32 to vector<4x1xf32>
    %344 = arith.divf %340, %343 : vector<4x1xf32>
    %345 = arith.mulf %342, %342 : vector<4x1xf32>
    %346 = arith.subf %344, %345 : vector<4x1xf32>
    %cst_346 = arith.constant 9.99999974E-6 : f32
    %347 = vector.broadcast %cst_346 : f32 to vector<4x1xf32>
    %348 = arith.addf %346, %347 : vector<4x1xf32>
    %349 = math.rsqrt %348 : vector<4x1xf32>
    %c0_347 = arith.constant 0 : index
    %c0_348 = arith.constant 0 : index
    %350 = vector.load %arg9[%c0_347, %c0_348] : memref<4x1xf32, #tpu.memory_space<vmem>>, vector<4x1xf32>
    %351 = arith.mulf %349, %350 : vector<4x1xf32>
    %c0_349 = arith.constant 0 : index
    %c0_350 = arith.constant 0 : index
    %352 = vector.load %arg10[%c0_349, %c0_350] : memref<4x1xf32, #tpu.memory_space<vmem>>, vector<4x1xf32>
    %353 = arith.mulf %342, %351 : vector<4x1xf32>
    %354 = arith.subf %352, %353 : vector<4x1xf32>
    %355 = vector.broadcast %351 : vector<4x1xf32> to vector<4x256xf32>
    %356 = arith.mulf %261, %355 : vector<4x256xf32>
    %357 = vector.broadcast %354 : vector<4x1xf32> to vector<4x256xf32>
    %358 = arith.addf %356, %357 : vector<4x256xf32>
    %cst_351 = arith.constant 0.000000e+00 : f32
    %359 = vector.broadcast %cst_351 : f32 to vector<4x256xf32>
    %360 = arith.maximumf %358, %359 : vector<4x256xf32>
    %c0_352 = arith.constant 0 : index
    %c0_353 = arith.constant 0 : index
    %c0_354 = arith.constant 0 : index
    %361 = vector.load %arg11[%c0_352, %c0_353, %c0_354] : memref<2x4x256xf32, #tpu.memory_space<vmem>>, vector<1x4x256xf32>
    %362 = vector.shape_cast %361 : vector<1x4x256xf32> to vector<4x256xf32>
    %363 = vector.shape_cast %360 : vector<4x256xf32> to vector<1x4x256xf32>
    tpu.vector_store %arg11[%c0_352, %c0_353, %c0_354], %363 {strides = array<i32>} : memref<2x4x256xf32, #tpu.memory_space<vmem>>, vector<1x4x256xf32>,
    %364 = vector.broadcast %351 : vector<4x1xf32> to vector<4x256xf32>
    %365 = arith.mulf %324, %364 : vector<4x256xf32>
    %366 = vector.broadcast %354 : vector<4x1xf32> to vector<4x256xf32>
    %367 = arith.addf %365, %366 : vector<4x256xf32>
    %cst_355 = arith.constant 0.000000e+00 : f32
    %368 = vector.broadcast %cst_355 : f32 to vector<4x256xf32>
    %369 = arith.maximumf %367, %368 : vector<4x256xf32>
    %c1_356 = arith.constant 1 : index
    %c0_357 = arith.constant 0 : index
    %c0_358 = arith.constant 0 : index
    %370 = vector.load %arg11[%c1_356, %c0_357, %c0_358] : memref<2x4x256xf32, #tpu.memory_space<vmem>>, vector<1x4x256xf32>
    %371 = vector.shape_cast %370 : vector<1x4x256xf32> to vector<4x256xf32>
    %372 = vector.shape_cast %369 : vector<4x256xf32> to vector<1x4x256xf32>
    tpu.vector_store %arg11[%c1_356, %c0_357, %c0_358], %372 {strides = array<i32>} : memref<2x4x256xf32, #tpu.memory_space<vmem>>, vector<1x4x256xf32>,
    return
  }
}

</mosaic_0001>

<bundles_post_ra>
// kernel: tpu_custom_call.1
= control target key start
LH: loop header
LB: loop body
LE: loop exit
PB: predicated region body
PF: predicated region fallthrough
CT: control target
= control target key end

     0   :  { %16 = vsyncpa [#allocation5], 0  ;;  %s4702_s0 = inlined_call_operand.hbm [shape: f32[8,64], index: 0, kind: input, shape index: {}]   ;;  %s4703_s1 = inlined_call_operand.hbm [shape: f32[2,4,416], index: 1, kind: input, shape index: {}]   ;;  %s4704_s2 = inlined_call_operand.hbm [shape: f32[64,416], index: 2, kind: input, shape index: {}]   ;;  %s4705_s3 = inlined_call_operand.vmem [shape: f32[1,256], index: 3, kind: input, shape index: {}]   ;;  %s4706_s4 = inlined_call_operand.hbm [shape: f32[1,256], index: 4, kind: input, shape index: {}]   ;;  %s4707_s5 = inlined_call_operand.vmem [shape: f32[3,3,4,8], index: 5, kind: input, shape index: {}]   ;;  %s4708_s6 = inlined_call_operand.vmem [shape: f32[4,1], index: 6, kind: input, shape index: {}]   ;;  %s4709_s7 = inlined_call_operand.vmem [shape: f32[4,1], index: 7, kind: input, shape index: {}]   ;;  %s4710_s8 = inlined_call_operand.hbm [shape: f32[3,3,4,4], index: 8, kind: input, shape index: {}]   ;;  %s4711_s9 = inlined_call_operand.vmem [shape: f32[4,1], index: 9, kind: input, shape index: {}]   ;;  %s4712_s10 = inlined_call_operand.vmem [shape: f32[4,1], index: 10, kind: input, shape index: {}]   ;;  %s4713_s11 = inlined_call_operand.hbm [shape: f32[2,4,256], index: 11, kind: output, shape index: {}]  }
   0x1   :  { %17 = vsyncpa [#allocation8], 0 }
   0x2   :  { %18 = vsyncpa [#allocation11], 0 }
   0x3   :  { %19 = vsyncpa [#allocation6], 0  ;;  %s4013_s17 = smov [#allocation7]   ;;  %s3873_s21 = scalar_lea.hbm %s4703_s1, 512 }
   0x4   :  { %s35_s18 = sshll.u32 %s4013_s17, 4  ;;  %p3874_p0 = scmp.ne.s32.totalorder %s4703_s1, %s3873_s21  ;;  %s36_s18 = int_to_ptr.vmem [resolvable:$true] %s35_s18 }
   0x5   :  { %p3877_p1 = scmp.lt.u32.totalorder %s3873_s21, %s4703_s1 }
   0x7   :  { %p3879_p2 = pnand %p3877_p1, %p3874_p0 }
   0x9   :  { %3882 = shalt.err (!%p3879_p2)
}
   0xa   :  { %s3883_s26 = scalar_lea.vmem %s36_s18, 512  ;;  %p3888_p4 = scmp.lt.s32.totalorder %s36_s18, %s36_s18 }
   0xb   :  { %p3884_p3 = scmp.ne.s32.totalorder %s36_s18, %s3883_s26  ;;  %p3889_p5 = scmp.lt.s32.totalorder %s3883_s26, %s3883_s26 }
   0xd   :  { %p3890_p6 = por %p3889_p5, %p3888_p4 }
   0xf   :  { %p3891_p7 = pnand %p3890_p6, %p3884_p3 }
  0x11   :  { %3894 = shalt.err (!%p3891_p7)
}
  0x12   :  { %s4014_s27 = smov 256   ;;  %s4015_s28 = smov 16  }
  0x13   :  { %41 = dma.hbm_to_vmem [thread:$0]  %s4703_s1, 512, %s36_s18, [#allocation8], %s4014_s27, %s4014_s27, %s4015_s28  }
  0x14   :  { %s4016_s12 = smov [#allocation10]   ;;  %s4017_s14 = smov [#allocation4]  }
  0x15   :  { %s62_s13 = sshll.u32 %s4016_s12, 4  ;;  %s26_s15 = sshll.u32 %s4017_s14, 4  ;;  %s63_s13 = int_to_ptr.vmem [resolvable:$true] %s62_s13  ;;  %s27_s15 = int_to_ptr.vmem [resolvable:$true] %s26_s15 }
  0x16   :  { %s3895_s19 = scalar_lea.hbm %s4706_s4, 32 }
  0x17   :  { %p3896_p8 = scmp.ne.s32.totalorder %s4706_s4, %s3895_s19  ;;  %p3899_p9 = scmp.lt.u32.totalorder %s3895_s19, %s4706_s4 }
  0x19   :  { %p3901_p10 = pnand %p3899_p9, %p3896_p8 }
  0x1b   :  { %3904 = shalt.err (!%p3901_p10)
}
  0x1c   :  { %s3905_s1 = scalar_lea.vmem %s63_s13, 32  ;;  %p3910_p12 = scmp.lt.s32.totalorder %s63_s13, %s63_s13 }
  0x1d   :  { %p3906_p11 = scmp.ne.s32.totalorder %s63_s13, %s3905_s1  ;;  %p3911_p13 = scmp.lt.s32.totalorder %s3905_s1, %s3905_s1 }
  0x1f   :  { %p3912_p0 = por %p3911_p13, %p3910_p12 }
  0x21   :  { %p3913_p1 = pnand %p3912_p0, %p3906_p11 }
  0x23   :  { %3916 = shalt.err (!%p3913_p1)
}
  0x24   :  { %65 = dma.hbm_to_vmem [thread:$0]  %s4706_s4, 32, %s63_s13, [#allocation11]  }
  0x25   :  { %s3917_s27 = scalar_lea.hbm %s4702_s0, 128 }
  0x26   :  { %p3918_p2 = scmp.ne.s32.totalorder %s4702_s0, %s3917_s27  ;;  %p3921_p3 = scmp.lt.u32.totalorder %s3917_s27, %s4702_s0 }
  0x28   :  { %p3923_p4 = pnand %p3921_p3, %p3918_p2 }
  0x2a   :  { %3926 = shalt.err (!%p3923_p4)
}
  0x2b   :  { %s3927_s16 = scalar_lea.vmem %s27_s15, 128  ;;  %p3932_p6 = scmp.lt.s32.totalorder %s27_s15, %s27_s15 }
  0x2c   :  { %p3928_p5 = scmp.ne.s32.totalorder %s27_s15, %s3927_s16  ;;  %p3933_p7 = scmp.lt.s32.totalorder %s3927_s16, %s3927_s16 }
  0x2e   :  { %p3934_p8 = por %p3933_p7, %p3932_p6 }
  0x30   :  { %p3935_p9 = pnand %p3934_p8, %p3928_p5 }
  0x32   :  { %3938 = shalt.err (!%p3935_p9)
}
  0x33   :  { %29 = dma.hbm_to_vmem [thread:$0]  %s4702_s0, 128, %s27_s15, [#allocation5]  }
  0x34   :  { %s4018_s17 = smov [#allocation9]   ;;  %s3939_s22 = scalar_lea.hbm %s4704_s2, 4096 }
  0x35   :  { %s47_s19 = sshll.u32 %s4018_s17, 4  ;;  %p3940_p10 = scmp.ne.s32.totalorder %s4704_s2, %s3939_s22  ;;  %s48_s19 = int_to_ptr.vmem [resolvable:$true] %s47_s19 }
  0x36   :  { %p3943_p11 = scmp.lt.u32.totalorder %s3939_s22, %s4704_s2 }
  0x38   :  { %p3945_p12 = pnand %p3943_p11, %p3940_p10 }
  0x3a   :  { %3948 = shalt.err (!%p3945_p12)
}
  0x3b   :  { %s3949_s25 = scalar_lea.vmem %s48_s19, 4096  ;;  %p3954_p0 = scmp.lt.s32.totalorder %s48_s19, %s48_s19 }
  0x3c   :  { %p3950_p13 = scmp.ne.s32.totalorder %s48_s19, %s3949_s25  ;;  %p3955_p1 = scmp.lt.s32.totalorder %s3949_s25, %s3949_s25 }
  0x3e   :  { %p3956_p2 = por %p3955_p1, %p3954_p0 }
  0x40   :  { %p3957_p3 = pnand %p3956_p2, %p3950_p13 }
  0x42   :  { %3960 = shalt.err (!%p3957_p3)
}
  0x43   :  { %s4019_s0 = smov 512   ;;  %s4020_s15 = smov 32  }
  0x44   :  { %53 = dma.hbm_to_vmem [thread:$0]  %s4704_s2, 4096, %s48_s19, [#allocation8], %s4019_s0, %s4019_s0, %s4020_s15  }
  0x45   :  { %s4021_s29 = smov [#allocation12]   ;;  %s3961_s16 = scalar_lea.hbm %s4710_s8, 576 }
  0x46   :  { %s77_s30 = sshll.u32 %s4021_s29, 4  ;;  %p3962_p4 = scmp.ne.s32.totalorder %s4710_s8, %s3961_s16  ;;  %s78_s30 = int_to_ptr.vmem [resolvable:$true] %s77_s30 }
  0x47   :  { %p3965_p5 = scmp.lt.u32.totalorder %s3961_s16, %s4710_s8 }
  0x49   :  { %p3967_p6 = pnand %p3965_p5, %p3962_p4 }
  0x4b   :  { %3970 = shalt.err (!%p3967_p6)
}
  0x4c   :  { %s3971_s21 = scalar_lea.vmem %s78_s30, 576  ;;  %p3976_p8 = scmp.lt.s32.totalorder %s78_s30, %s78_s30 }
  0x4d   :  { %p3972_p7 = scmp.ne.s32.totalorder %s78_s30, %s3971_s21  ;;  %p3977_p9 = scmp.lt.s32.totalorder %s3971_s21, %s3971_s21 }
  0x4f   :  { %p3978_p10 = por %p3977_p9, %p3976_p8 }
  0x51   :  { %p3979_p11 = pnand %p3978_p10, %p3972_p7 }
  0x53   :  { %3982 = shalt.err (!%p3979_p11)
}
  0x54   :  { %s4022_s2 = smov 64   ;;  %s4023_s19 = smov 4  }
  0x55   :  { %83 = dma.hbm_to_vmem [thread:$0]  %s4710_s8, 576, %s78_s30, [#allocation11], %s4022_s2, %s4022_s2, %s4023_s19  }
  0x56   :  { %4005 = dma.done.wait [#allocation5], 128  }
  0x57   :  { %4006 = vsyncadd [#allocation5], 4294967168 }
  0x58   :  { %4007 = dma.done.wait [#allocation8], 4608  }
  0x59   :  { %4008 = vsyncadd [#allocation8], 4294962688 }
  0x5a   :  { %4009 = dma.done.wait [#allocation11], 608  }
  0x5b   :  { %4010 = vsyncadd [#allocation11], 4294966688  ;;  %v4024_v0 = vmov 0.0   ;;  %v109_v1 = vld [vmem:[#allocation9 + $0x18] sm:$0xff]  ;;  %v108_v3 = vld [vmem:[#allocation9 + $0x10] sm:$0xff]  ;;  %vm138_vm0 = vcmask 523264  }
  0x5c   :  { %277 = vmatprep.mubr.f32.mxu1 %v4024_v0  ;;  %1897 = vst [vmem:[#allocation3] sm:$0xff] %v4024_v0  ;;  %1901 = vst [vmem:[#allocation3 + $0x10] sm:$0xff] %v4024_v0  ;;  %206 = vmatprep.mubr.f32.mxu0 %v4024_v0  ;;  %v113_v2 = vld [vmem:[#allocation9 + $0x38] sm:$0xff]  ;;  %v112_v5 = vld [vmem:[#allocation9 + $0x30] sm:$0xff]  ;;  %vm295_vm1 = vcmask 257024   ;;  %vm312_vm2 = vcmask 261124  }
  0x5d   :  { %v3772_v4 = vpack.c.bf16 %v113_v2, %v109_v1  ;;  %v107_v6 = vld [vmem:[#allocation9 + $0x8] sm:$0xff]  ;;  %v3774_v8 = vpack.c.bf16 %v112_v5, %v108_v3  ;;  %v106_v10 = vld [vmem:[#allocation9] sm:$0xff]  ;;  %v117_v12 = vld [vmem:[#allocation9 + $0x58] sm:$0xff]  ;;  %vm1898_vm3 = vcmask 1043456   ;;  %s4025_s8 = smov 17   ;;  %s4026_s1 = smov 1  }
  0x5e   :  { %v111_v7 = vld [vmem:[#allocation9 + $0x28] sm:$0xff]  ;;  %v110_v11 = vld [vmem:[#allocation9 + $0x20] sm:$0xff]  ;;  %v121_v14 = vld [vmem:[#allocation9 + $0x78] sm:$0xff]  ;;  %s4027_s18 = smov 127   ;;  %s4028_s24 = smov 15   ;;  %vm356_vm5 = vcmask 64512  }
  0x5f   :  { %v3756_v9 = vpack.c.bf16 %v111_v7, %v107_v6  ;;  %3773 = vmatprep.subr.bf16.mxu1 %v3772_v4  ;;  %v3758_v13 = vpack.c.bf16 %v110_v11, %v106_v10  ;;  %v116_v15 = vld [vmem:[#allocation9 + $0x50] sm:$0xff]  ;;  %v3776_v17 = vpack.c.bf16 %v121_v14, %v117_v12  ;;  %v115_v19 = vld [vmem:[#allocation9 + $0x48] sm:$0xff]  ;;  %v114_v21 = vld [vmem:[#allocation9 + $0x40] sm:$0xff]  ;;  %s4029_s25 = smov 112   ;;  %s4030_s0 = smov 113   ;;  %vm351_vm6 = vcmask 7168  }
  0x60   :  { %v120_v16 = vld [vmem:[#allocation9 + $0x70] sm:$0xff]  ;;  %3775 = vmatpush1.bf16.msra.mxu1 %v3774_v8  ;;  %v119_v20 = vld [vmem:[#allocation9 + $0x68] sm:$0xff]  ;;  %v118_v23 = vld [vmem:[#allocation9 + $0x60] sm:$0xff]  ;;  %s4031_s27 = smov 111   ;;  %vm437_vm7 = vcmask 138240   ;;  %vm598_vm8 = vcmask 130048  }
  0x61   :  { %3757 = vmatprep.subr.bf16.mxu0 %v3756_v9  ;;  %v3778_v18 = vpack.c.bf16 %v120_v16, %v116_v15  ;;  %v3760_v22 = vpack.c.bf16 %v119_v20, %v115_v19  ;;  %v125_v24 = vld [vmem:[#allocation9 + $0x98] sm:$0xff]  ;;  %3777 = vmatprep.subr.bf16.mxu1 %v3776_v17  ;;  %v3762_v26 = vpack.c.bf16 %v118_v23, %v114_v21  ;;  %v124_v28 = vld [vmem:[#allocation9 + $0x90] sm:$0xff]  ;;  %v123_v30 = vld [vmem:[#allocation9 + $0x88] sm:$0xff]  ;;  %vm691_vm9 = vcmask 1039360  }
  0x62   :  { %3759 = vmatpush1.bf16.msra.mxu0 %v3758_v13  ;;  %v129_v25 = vld [vmem:[#allocation9 + $0xb8] sm:$0xff]  ;;  %v128_v29 = vld [vmem:[#allocation9 + $0xb0] sm:$0xff]  ;;  %v127_v31 = vld [vmem:[#allocation9 + $0xa8] sm:$0xff]  ;;  %vm952_vm10 = vcmask 916480   ;;  %vm776_vm11 = vcmask 121856   ;;  %vm863_vm12 = vcmask 924672  }
  0x63   :  { %v3780_v27 = vpack.c.bf16 %v129_v25, %v125_v24  ;;  %3761 = vmatprep.subr.bf16.mxu0 %v3760_v22  ;;  %v122_v32 = vld [vmem:[#allocation9 + $0x80] sm:$0xff]  ;;  %v3782_v34 = vpack.c.bf16 %v128_v29, %v124_v28  ;;  %v3764_v35 = vpack.c.bf16 %v127_v31, %v123_v30  ;;  %v133_v36 = vld [vmem:[#allocation9 + $0xd8] sm:$0xff]  ;;  %v132_v38 = vld [vmem:[#allocation9 + $0xd0] sm:$0xff]  ;;  %vm1041_vm13 = vcmask 908288  }
  0x64   :  { %v126_v33 = vld [vmem:[#allocation9 + $0xa0] sm:$0xff]  ;;  %3779 = vmatpush1.bf16.msra.mxu1 %v3778_v18  ;;  %v137_v37 = vld [vmem:[#allocation9 + $0xf8] sm:$0xff]  ;;  %v136_v41 = vld [vmem:[#allocation9 + $0xf0] sm:$0xff]  ;;  %vm1996_vm14 = vcmask 31744  }
  0x65   :  { %3781 = vmatprep.subr.bf16.mxu1 %v3780_v27  ;;  %v3766_v39 = vpack.c.bf16 %v126_v33, %v122_v32  ;;  %v3784_v40 = vpack.c.bf16 %v137_v37, %v133_v36  ;;  %v131_v42 = vld [vmem:[#allocation9 + $0xc8] sm:$0xff]  ;;  %v130_v45 = vld [vmem:[#allocation9 + $0xc0] sm:$0xff]  ;;  %v3786_v47 = vpack.c.bf16 %v136_v41, %v132_v38  ;;  %v105_v49 = vld [vmem:[#allocation4] sm:$0xff] }
  0x66   :  { %3763 = vmatpush1.bf16.msra.mxu0 %v3762_v26  ;;  %v135_v43 = vld [vmem:[#allocation9 + $0xe8] sm:$0xff]  ;;  %v134_v46 = vld [vmem:[#allocation9 + $0xe0] sm:$0xff]  ;;  %v316_v50 = vld [vmem:[#allocation7 + $0x18] sm:$0xff] }
  0x67   :  { %3765 = vmatprep.subr.bf16.mxu0 %v3764_v35  ;;  %v3768_v44 = vpack.c.bf16 %v135_v43, %v131_v42  ;;  %v3770_v48 = vpack.c.bf16 %v134_v46, %v130_v45  ;;  %v320_v51 = vcombine.high %v316_v50, %v316_v50  ;;  %326 = vst [vmem:[#allocation2 + $0x30] sm:$0xf] %v316_v50  ;;  %v285_v52 = vld [vmem:[#allocation7 + $0x8] sm:$0xff]  ;;  %v315_v54 = vld [vmem:[#allocation7 + $0x10] sm:$0xff]  ;;  %v284_v56 = vld [vmem:[#allocation7] sm:$0xff] }
  0x68   :  { %3783 = vmatpush1.bf16.msra.mxu1 %v3782_v34  ;;  %v289_v53 = vcombine.high %v285_v52, %v285_v52  ;;  %294 = vst [vmem:[#allocation2 + $0x10] sm:$0xf] %v285_v52  ;;  %v319_v55 = vcombine.high %v315_v54, %v315_v54  ;;  %324 = vst [vmem:[#allocation2 + $0x20] sm:$0xf] %v315_v54  ;;  %v288_v57 = vcombine.high %v284_v56, %v284_v56  ;;  %v4198_v10 = vld [vmem:[%s4707_s5 + $0x10] sm:$0xf] }
  0x69   :  { %3785 = vmatprep.subr.bf16.mxu1 %v3784_v40  ;;  %327 = vst.msk [vmem:[#allocation2 + $0x38] sm:$0xf] %vm295_vm1, %v320_v51  ;;  %vm1899_vm4 = vmor %vm312_vm2, %vm1898_vm3  ;;  %v4270_v36 = vld [vmem:[%s4707_s5 + $0xc] sm:$0xf]  ;;  %v4284_v43 = vld [vmem:[%s4707_s5 + $0x4] sm:$0xf] }
  0x6a   :  { %3767 = vmatpush1.bf16.msra.mxu0 %v3766_v39  ;;  %296 = vst.msk [vmem:[#allocation2 + $0x18] sm:$0xf] %vm295_vm1, %v289_v53  ;;  %325 = vst [vmem:[#allocation2 + $0x28] sm:$0xf] %v319_v55  ;;  %v4295_v46 = vld [vmem:[%s4707_s5] sm:$0xf] }
  0x6b   :  { %3769 = vmatprep.subr.bf16.mxu0 %v3768_v44  ;;  %292 = vst [vmem:[#allocation2] sm:$0xf] %v284_v56  ;;  %1900 = vst.msk [vmem:[#allocation3 + $0x8] sm:$0xff] %vm1899_vm4, %v4024_v0  ;;  %v4306_v51 = vld [vmem:[%s4707_s5 + $0x14] sm:$0xf] }
  0x6c   :  { %3787 = vmatpush1.bf16.msra.mxu1 %v3786_v47  ;;  %1902 = vst.msk [vmem:[#allocation3 + $0x18] sm:$0xff] %vm1899_vm4, %v4024_v0  ;;  %293 = vst [vmem:[#allocation2 + $0x8] sm:$0xf] %v288_v57  ;;  %v4315_v57 = vld [vmem:[%s4707_s5 + $0x1c] sm:$0xf] }
  0x6e   :  { %3771 = vmatpush1.bf16.msra.mxu0 %v3770_v48 }
  0x6f   :  { %3675 = vmatmul.mubr.msk.f32.vlgmr.msra.gmra.mrb[0].mxu1 %vm138_vm0, %v105_v49 }
  0x70   :  { %585 = vmatprep.mubr.f32.mxu1 %v4024_v0 }
  0x71   :  { %3674 = vmatmul.mubr.msk.f32.vlgmr.msra.gmra.mrb[0].mxu0 %vm138_vm0, %v105_v49 }
  0x72   :  { %424 = vmatprep.mubr.f32.mxu0 %v4024_v0 }
 0x142   :  { %v279_v58 = vpop.f32.mrb[0].mxu1 }
 0x143   :  { %v303_v59 = vrot.slane %v279_v58, 4  ;;  %330 = vst [vmem:[#allocation2 + $0x30] sm:$0xf0] %v279_v58  ;;  %v281_v60 = vpop.f32.mrb[1].mxu1 }
 0x144   :  { %v208_v61 = vpop.f32.mrb[0].mxu0  ;;  %v304_v62 = vrot.slane %v281_v60, 4  ;;  %331 = vst.msk [vmem:[#allocation2 + $0x38] sm:$0xf0] %vm312_vm2, %v281_v60 }
 0x145   :  { %v301_v63 = vrot.slane %v208_v61, 4  ;;  %328 = vst [vmem:[#allocation2 + $0x20] sm:$0xf0] %v208_v61  ;;  %v210_v1 = vpop.f32.mrb[1].mxu0  ;;  %311 = vst [vmem:[#allocation2 + $0x10] sm:$0xf0] %v303_v59 }
 0x146   :  { %v302_v2 = vrot.slane %v210_v1, 4  ;;  %329 = vst [vmem:[#allocation2 + $0x28] sm:$0xf0] %v210_v1  ;;  %313 = vst.msk [vmem:[#allocation2 + $0x18] sm:$0xf0] %vm312_vm2, %v304_v62 }
 0x147   :  { %309 = vst [vmem:[#allocation2] sm:$0xf0] %v301_v63  ;;  %v4323_v61 = vld [vmem:[%s4707_s5 + $0x8] sm:$0xf] }
 0x148   :  { %310 = vst [vmem:[#allocation2 + $0x8] sm:$0xf0] %v302_v2 }
 0x14a   :  { %v4169_v3 = vld [vmem:[#allocation2 + $0x30] sm:$0xff] }
 0x14b   :  { %1243 = vrot.lane.b32.xlu1 %v4169_v3, %s4025_s8  ;;  %1162 = vrot.lane.b32.xlu0 %v4169_v3, %s4026_s1  ;;  %v1474_v9 = vld [vmem:[#allocation2 + $0x38] sm:$0xff] }
 0x14c   :  { %v335_v4 = vld [vmem:[#allocation2 + $0x10] sm:$0xff]  ;;  %v1152_v5 = vld [vmem:[#allocation2 + $0x20] sm:$0xff] }
 0x14d   :  { %521 = vmatprep.subr.mxu1 %v335_v4  ;;  %v4177_v7 = vld [vmem:[#allocation2 + $0x28] sm:$0xff]  ;;  %v681_v11 = vld [vmem:[#allocation2 + $0x18] sm:$0xff] }
 0x14e   :  { %v333_v8 = vld [vmem:[#allocation2] sm:$0xff] }
 0x14f   :  { %v334_v6 = vld [vmem:[#allocation2 + $0x8] sm:$0xff]  ;;  %1239 = vrot.lane.b32.xlu1 %v1152_v5, %s4025_s8  ;;  %1158 = vrot.lane.b32.xlu0 %v1152_v5, %s4026_s1 }
 0x150   :  { %522 = vmatpush1.msra.mxu1 %v334_v6 }
 0x151   :  { %3682 = vmatmul.mubr.msk.f32.vlgmr.msra.gmra.mrb[2].mxu1 %vm356_vm5, %v4198_v10 }
 0x152   :  { %670 = vmatprep.mubr.f32.mxu1 %v4024_v0 }
 0x153   :  { %1241 = vrot.lane.b32.xlu0 %v4177_v7, %s4025_s8  ;;  %1160 = vrot.lane.b32.xlu1 %v4177_v7, %s4026_s1 }
 0x157   :  { %349 = vrot.lane.b32.xlu0 %v335_v4, %s4026_s1  ;;  %345 = vrot.lane.b32.xlu1 %v333_v8, %s4026_s1 }
 0x15b   :  { %435 = vrot.lane.b32.xlu0 %v335_v4, %s4025_s8  ;;  %431 = vrot.lane.b32.xlu1 %v333_v8, %s4025_s8 }
 0x15f   :  { %596 = vrot.lane.b32.xlu0 %v335_v4, %s4015_s28  ;;  %687 = vrot.lane.b32.xlu1 %v335_v4, %s4027_s18 }
 0x163   :  { %592 = vrot.lane.b32.xlu0 %v333_v8, %s4015_s28  ;;  %770 = vrot.lane.b32.xlu1 %v333_v8, %s4028_s24  ;;  %v4346_v8 = vld [vmem:[%s4707_s5 + $0x18] sm:$0xf] }
 0x167   :  { %948 = vrot.lane.b32.xlu0 %v335_v4, %s4029_s25  ;;  %859 = vrot.lane.b32.xlu1 %v335_v4, %s4030_s0 }
 0x16b   :  { %774 = vrot.lane.b32.xlu0 %v335_v4, %s4028_s24  ;;  %1482 = vrot.lane.b32.xlu1 %v1474_v9, %s4027_s18 }
 0x16f   :  { %1037 = vrot.lane.b32.xlu0 %v335_v4, %s4031_s27  ;;  %1393 = vrot.lane.b32.xlu1 %v4177_v7, %s4015_s28 }
 0x173   :  { %433 = vrot.lane.b32.xlu1 %v334_v6, %s4025_s8  ;;  %347 = vrot.lane.b32.xlu0 %v334_v6, %s4026_s1 }
 0x177   :  { %594 = vrot.lane.b32.xlu1 %v334_v6, %s4015_s28  ;;  %1480 = vrot.lane.b32.xlu0 %v4169_v3, %s4027_s18 }
 0x17b   :  { %1561 = vrot.lane.b32.xlu1 %v4177_v7, %s4028_s24  ;;  %1478 = vrot.lane.b32.xlu0 %v4177_v7, %s4027_s18 }
 0x17f   :  { %685 = vrot.lane.b32.xlu1 %v334_v6, %s4027_s18  ;;  %689 = vrot.lane.b32.xlu0 %v681_v11, %s4027_s18 }
 0x183   :  { %950 = vrot.lane.b32.xlu1 %v681_v11, %s4029_s25  ;;  %1395 = vrot.lane.b32.xlu0 %v4169_v3, %s4015_s28 }
 0x187   :  { %772 = vrot.lane.b32.xlu1 %v334_v6, %s4028_s24  ;;  %946 = vrot.lane.b32.xlu0 %v334_v6, %s4029_s25 }
 0x18b   :  { %857 = vrot.lane.b32.xlu1 %v334_v6, %s4030_s0  ;;  %861 = vrot.lane.b32.xlu0 %v681_v11, %s4030_s0 }
 0x18f   :  { %1039 = vrot.lane.b32.xlu1 %v681_v11, %s4031_s27  ;;  %1563 = vrot.lane.b32.xlu0 %v4169_v3, %s4028_s24 }
 0x193   :  { %1391 = vrot.lane.b32.xlu1 %v1152_v5, %s4015_s28  ;;  %1035 = vrot.lane.b32.xlu0 %v334_v6, %s4031_s27 }
 0x197   :  { %1642 = vrot.lane.b32.xlu1 %v4169_v3, %s4030_s0  ;;  %1559 = vrot.lane.b32.xlu0 %v1152_v5, %s4028_s24 }
 0x19b   :  { %1640 = vrot.lane.b32.xlu1 %v4177_v7, %s4030_s0  ;;  %1644 = vrot.lane.b32.xlu0 %v1474_v9, %s4030_s0 }
 0x19f   :  { %1727 = vrot.lane.b32.xlu1 %v1474_v9, %s4029_s25  ;;  %1725 = vrot.lane.b32.xlu0 %v4169_v3, %s4029_s25 }
 0x1a3   :  { %1810 = vrot.lane.b32.xlu1 %v1474_v9, %s4031_s27  ;;  %1808 = vrot.lane.b32.xlu0 %v4169_v3, %s4031_s27 }
 0x1a7   :  { %1806 = vrot.lane.b32.xlu1 %v4177_v7, %s4031_s27  ;;  %1723 = vrot.lane.b32.xlu0 %v4177_v7, %s4029_s25 }
 0x1bd   :  { %v4245_v12 = vpop.permute.xlu1 %1243  ;;  %v4247_v13 = vpop.permute.xlu0 %1162 }
 0x1c1   :  { %v4249_v14 = vpop.permute.xlu1 %1239  ;;  %v4251_v15 = vpop.permute.xlu0 %1158 }
 0x1c5   :  { %v4253_v16 = vpop.permute.xlu0 %1241  ;;  %v4255_v17 = vpop.permute.xlu1 %1160 }
 0x1c6   :  { %v1165_v62 = vsel %vm351_vm6, %v4255_v17, %v4247_v13  ;;  %v1164_v2 = vsel %vm351_vm6, %v4251_v15, %v4255_v17  ;;  %v1246_v5 = vsel %vm437_vm7, %v4253_v16, %v4245_v12  ;;  %v1245_v9 = vsel %vm437_vm7, %v4249_v14, %v4253_v16  ;;  %v3691_v14 = vld [vmem:[%s4707_s5 + $0x20] sm:$0xf] }
 0x1c9   :  { %v350_v18 = vpop.permute.xlu0 %349  ;;  %v346_v19 = vpop.permute.xlu1 %345 }
 0x1cd   :  { %v436_v20 = vpop.permute.xlu0 %435  ;;  %v432_v21 = vpop.permute.xlu1 %431 }
 0x1d1   :  { %v597_v22 = vpop.permute.xlu0 %596  ;;  %v688_v23 = vpop.permute.xlu1 %687 }
 0x1d5   :  { %v593_v24 = vpop.permute.xlu0 %592  ;;  %v771_v25 = vpop.permute.xlu1 %770 }
 0x1d9   :  { %v949_v26 = vpop.permute.xlu0 %948  ;;  %v4257_v27 = vpop.permute.xlu1 %859 }
 0x1dd   :  { %v775_v28 = vpop.permute.xlu0 %774  ;;  %v4259_v29 = vpop.permute.xlu1 %1482 }
 0x1e1   :  { %v4261_v30 = vpop.permute.xlu0 %1037  ;;  %v4263_v31 = vpop.permute.xlu1 %1393 }
 0x1e5   :  { %v434_v32 = vpop.permute.xlu1 %433  ;;  %v348_v33 = vpop.permute.xlu0 %347 }
 0x1e6   :  { %v352_v34 = vsel %vm351_vm6, %v346_v19, %v348_v33  ;;  %v353_v35 = vsel %vm351_vm6, %v348_v33, %v350_v18  ;;  %v439_v37 = vsel %vm437_vm7, %v434_v32, %v436_v20  ;;  %v438_v38 = vsel %vm437_vm7, %v432_v21, %v434_v32 }
 0x1e7   :  { %360 = vmatprep.subr.mxu0 %v353_v35 }
 0x1e8   :  { %361 = vmatpush1.msra.mxu0 %v352_v34 }
 0x1e9   :  { %v595_v39 = vpop.permute.xlu1 %594  ;;  %3679 = vmatmul.mubr.msk.f32.vlgmr.msra.gmra.mrb[2].mxu0 %vm356_vm5, %v4270_v36  ;;  %445 = vmatprep.subr.mxu0 %v439_v37  ;;  %v4276_v40 = vpop.permute.xlu0 %1480  ;;  %v1123_v37 = vlaneseq }
 0x1ea   :  { %v599_v41 = vsel %vm598_vm8, %v593_v24, %v595_v39  ;;  %446 = vmatpush1.msra.mxu0 %v438_v38  ;;  %v600_v42 = vsel %vm598_vm8, %v595_v39, %v597_v22  ;;  %509 = vmatprep.mubr.f32.mxu0 %v4024_v0  ;;  %v1485_v18 = vsel %vm691_vm9, %v4276_v40, %v4259_v29 }
 0x1eb   :  { %606 = vmatprep.subr.mxu1 %v600_v42  ;;  %v1124_v38 = vshrl.u32 %v1123_v37, 7 }
 0x1ec   :  { %607 = vmatpush1.msra.mxu1 %v599_v41 }
 0x1ed   :  { %v4286_v44 = vpop.permute.xlu1 %1561  ;;  %v4288_v45 = vpop.permute.xlu0 %1478  ;;  %3683 = vmatmul.mubr.msk.f32.vlgmr.msra.gmra.mrb[2].mxu1 %vm356_vm5, %v4284_v43  ;;  %v1125_v39 = vsub.s32 0, %v1124_v38  ;;  %v1129_v41 = vsub.s32 1, %v1124_v38 }
 0x1ee   :  { %1024 = vmatprep.mubr.f32.mxu1 %v4024_v0 }
 0x1f1   :  { %v686_v47 = vpop.permute.xlu1 %685  ;;  %3680 = vmatmul.mubr.msk.f32.vlgmr.msra.gmra.mrb[2].mxu0 %vm356_vm5, %v4295_v46  ;;  %v690_v48 = vpop.permute.xlu0 %689 }
 0x1f2   :  { %v692_v49 = vsel %vm691_vm9, %v686_v47, %v688_v23  ;;  %v693_v50 = vsel %vm691_vm9, %v688_v23, %v690_v48  ;;  %763 = vmatprep.mubr.f32.mxu0 %v4024_v0 }
 0x1f3   :  { %699 = vmatprep.subr.mxu0 %v693_v50 }
 0x1f4   :  { %700 = vmatpush1.msra.mxu0 %v692_v49  ;;  %v104_v49 = vld [vmem:[#allocation10] sm:$0x3] }
 0x1f5   :  { %v951_v52 = vpop.permute.xlu1 %950  ;;  %3685 = vmatmul.mubr.msk.f32.vlgmr.msra.gmra.mrb[4].mxu0 %vm356_vm5, %v4306_v51  ;;  %v1396_v53 = vpop.permute.xlu0 %1395 }
 0x1f6   :  { %v954_v54 = vsel %vm952_vm10, %v949_v26, %v951_v52  ;;  %848 = vmatprep.mubr.f32.mxu0 %v4024_v0  ;;  %v1398_v22 = vsel %vm598_vm8, %v4263_v31, %v1396_v53  ;;  %v4421_v53 = vrot.slane %v104_v49, %v1125_v39 }
 0x1f7   :  { %960 = vmatprep.subr.mxu1 %v954_v54  ;;  %v4423_v54 = vrot.slane %v104_v49, %v1129_v41  ;;  %v2702_v49 = vld [vmem:[#allocation3 + $0xc] sm:$0xf] }
 0x1f9   :  { %v773_v55 = vpop.permute.xlu1 %772  ;;  %v947_v56 = vpop.permute.xlu0 %946 }
 0x1fa   :  { %v777_v58 = vsel %vm776_vm11, %v771_v25, %v773_v55  ;;  %v953_v59 = vsel %vm952_vm10, %v947_v56, %v949_v26  ;;  %v778_v60 = vsel %vm776_vm11, %v773_v55, %v775_v28 }
 0x1fb   :  { %784 = vmatprep.subr.mxu0 %v778_v60  ;;  %961 = vmatpush1.msra.mxu1 %v953_v59 }
 0x1fc   :  { %785 = vmatpush1.msra.mxu0 %v777_v58  ;;  %3690 = vmatmul.mubr.msk.f32.vlgmr.msra.gmra.mrb[2].mxu1 %vm356_vm5, %v4315_v57 }
 0x1fd   :  { %1168 = vmatprep.subr.mxu1 %v1165_v62  ;;  %v858_v63 = vpop.permute.xlu1 %857  ;;  %3686 = vmatmul.mubr.msk.f32.vlgmr.msra.gmra.mrb[4].mxu0 %vm356_vm5, %v4323_v61  ;;  %v862_v1 = vpop.permute.xlu0 %861 }
 0x1fe   :  { %v864_v4 = vsel %vm863_vm12, %v858_v63, %v4257_v27  ;;  %1169 = vmatpush1.msra.mxu1 %v1164_v2  ;;  %v865_v6 = vsel %vm863_vm12, %v4257_v27, %v862_v1  ;;  %1232 = vmatprep.mubr.f32.mxu1 %v4024_v0 }
 0x1ff   :  { %1249 = vmatprep.subr.mxu1 %v1246_v5  ;;  %871 = vmatprep.subr.mxu0 %v865_v6 }
 0x200   :  { %872 = vmatpush1.msra.mxu0 %v864_v4  ;;  %935 = vmatprep.mubr.f32.mxu0 %v4024_v0 }
 0x201   :  { %3693 = vmatmul.mubr.msk.f32.vlgmr.msra.gmra.mrb[4].mxu1 %vm356_vm5, %v4270_v36  ;;  %v1040_v11 = vpop.permute.xlu1 %1039  ;;  %3688 = vmatmul.mubr.msk.f32.vlgmr.msra.gmra.mrb[2].mxu0 %vm356_vm5, %v4346_v8  ;;  %v1564_v12 = vpop.permute.xlu0 %1563 }
 0x202   :  { %1250 = vmatpush1.msra.mxu1 %v1245_v9  ;;  %v1043_v13 = vsel %vm1041_vm13, %v4261_v30, %v1040_v11  ;;  %1113 = vmatprep.mubr.f32.mxu0 %v4024_v0  ;;  %v1566_v21 = vsel %vm776_vm11, %v4286_v44, %v1564_v12 }
 0x203   :  { %1320 = vmatprep.subr.mxu1 %v4169_v3  ;;  %1049 = vmatprep.subr.mxu0 %v1043_v13  ;;  %v1484_v3 = vsel %vm691_vm9, %v4288_v45, %v4276_v40  ;;  %v103_v40 = vld [vmem:[%s4705_s3] sm:$0x3] }
 0x204   :  { %1313 = vmatprep.mubr.f32.mxu1 %v4024_v0  ;;  %v4417_v45 = vrot.slane %v103_v40, %v1129_v41 }
 0x205   :  { %v1392_v15 = vpop.permute.xlu1 %1391  ;;  %v1036_v17 = vpop.permute.xlu0 %1035 }
 0x206   :  { %v1042_v16 = vsel %vm1041_vm13, %v1036_v17, %v4261_v30  ;;  %v1397_v24 = vsel %vm598_vm8, %v1392_v15, %v4263_v31 }
 0x207   :  { %1050 = vmatpush1.msra.mxu0 %v1042_v16 }
 0x208   :  { %3692 = vmatmul.mubr.msk.f32.vlgmr.msra.gmra.mrb[4].mxu0 %vm356_vm5, %v3691_v14  ;;  %1488 = vmatprep.subr.mxu0 %v1485_v18 }
 0x209   :  { %3694 = vmatmul.mubr.msk.f32.vlgmr.msra.gmra.mrb[4].mxu1 %vm356_vm5, %v4295_v46  ;;  %v1643_v19 = vpop.permute.xlu1 %1642  ;;  %1489 = vmatpush1.msra.mxu0 %v1484_v3  ;;  %v1560_v20 = vpop.permute.xlu0 %1559 }
 0x20a   :  { %1321 = vmatpush1.msra.mxu1 %v4177_v7  ;;  %1569 = vmatprep.subr.mxu0 %v1566_v21  ;;  %v1565_v23 = vsel %vm776_vm11, %v1560_v20, %v4286_v44  ;;  %v4415_v44 = vrot.slane %v103_v40, %v1125_v39  ;;  %v1938_v40 = vld [vmem:[%s4708_s6] sm:$0xf] }
 0x20b   :  { %1401 = vmatprep.subr.mxu1 %v1398_v22  ;;  %1384 = vmatprep.mubr.f32.mxu1 %v4024_v0 }
 0x20c   :  { %1552 = vmatprep.mubr.f32.mxu0 %v4024_v0 }
 0x20d   :  { %3695 = vmatmul.mubr.msk.f32.vlgmr.msra.gmra.mrb[6].mxu1 %vm356_vm5, %v4198_v10  ;;  %3697 = vmatmul.mubr.msk.f32.vlgmr.msra.gmra.mrb[6].mxu0 %vm356_vm5, %v4306_v51  ;;  %v1641_v7 = vpop.permute.xlu1 %1640  ;;  %v1645_v25 = vpop.permute.xlu0 %1644 }
 0x20e   :  { %1402 = vmatpush1.msra.mxu1 %v1397_v24  ;;  %1570 = vmatpush1.msra.mxu0 %v1565_v23  ;;  %v1647_v26 = vsel %vm863_vm12, %v1643_v19, %v1645_v25  ;;  %v1646_v29 = vsel %vm863_vm12, %v1641_v7, %v1643_v19 }
 0x20f   :  { %1650 = vmatprep.subr.mxu1 %v1647_v26  ;;  %1465 = vmatprep.mubr.f32.mxu1 %v4024_v0 }
 0x210   :  { %1633 = vmatprep.mubr.f32.mxu0 %v4024_v0 }
 0x211   :  { %v1728_v27 = vpop.permute.xlu1 %1727  ;;  %v1726_v28 = vpop.permute.xlu0 %1725 }
 0x212   :  { %v1730_v31 = vsel %vm952_vm10, %v1726_v28, %v1728_v27 }
 0x215   :  { %3696 = vmatmul.mubr.msk.f32.vlgmr.msra.gmra.mrb[6].mxu1 %vm356_vm5, %v4284_v43  ;;  %3698 = vmatmul.mubr.msk.f32.vlgmr.msra.gmra.mrb[6].mxu0 %vm356_vm5, %v4323_v61  ;;  %v1811_v10 = vpop.permute.xlu1 %1810  ;;  %v1809_v30 = vpop.permute.xlu0 %1808 }
 0x216   :  { %1651 = vmatpush1.msra.mxu1 %v1646_v29  ;;  %1714 = vmatprep.mubr.f32.mxu1 %v4024_v0  ;;  %v1813_v32 = vsel %vm1041_vm13, %v1809_v30, %v1811_v10  ;;  %v4032_v29 = vmov 0  }
 0x217   :  { %1733 = vmatprep.subr.mxu1 %v1730_v31  ;;  %1816 = vmatprep.subr.mxu0 %v1813_v32 }
 0x218   :  { %1880 = vmatprep.mubr.f32.mxu0 %v4024_v0  ;;  %3859 = vset.pattern.permute.xlu1 %v4032_v29 }
 0x219   :  { %3699 = vmatmul.mubr.msk.f32.vlgmr.msra.gmra.mrb[4].mxu1 %vm356_vm5, %v4346_v8  ;;  %v1807_v33 = vpop.permute.xlu1 %1806  ;;  %v1724_v34 = vpop.permute.xlu0 %1723  ;;  %3860 = vset.pattern.permute.xlu0 %v4032_v29 }
 0x21a   :  { %v1812_v35 = vsel %vm1041_vm13, %v1807_v33, %v1809_v30  ;;  %v1729_v36 = vsel %vm952_vm10, %v1724_v34, %v1726_v28  ;;  %1797 = vmatprep.mubr.f32.mxu1 %v4024_v0 }
 0x21b   :  { %1734 = vmatpush1.msra.mxu1 %v1729_v36  ;;  %1817 = vmatpush1.msra.mxu0 %v1812_v35 }
 0x21d   :  { %3700 = vmatmul.mubr.msk.f32.vlgmr.msra.gmra.mrb[6].mxu1 %vm356_vm5, %v4315_v57  ;;  %3701 = vmatmul.mubr.msk.f32.vlgmr.msra.gmra.mrb[6].mxu0 %vm356_vm5, %v3691_v14 }
 0x21e   :  { %2237 = vmatprep.mubr.f32.mxu1 %v4024_v0  ;;  %2068 = vmatprep.mubr.f32.mxu0 %v4024_v0 }
 0x2cf   :  { %v1026_v42 = vpop.f32.mrb[2].mxu1 }
 0x2d0   :  { %v1028_v43 = vpop.f32.mrb[3].mxu1 }
 0x2d4   :  { %v937_v46 = vpop.f32.mrb[2].mxu0 }
 0x2d5   :  { %v1133_v47 = vmul.f32 %v4415_v44, %v937_v46  ;;  %v939_v48 = vpop.f32.mrb[3].mxu0 }
 0x2d6   :  { %v1134_v50 = vmul.f32 %v4417_v45, %v939_v48  ;;  %v2607_v48 = vld [vmem:[#allocation3 + $0xc] sm:$0xf] }
 0x2d7   :  { %v1135_v51 = vadd.f32 %v1133_v47, %v1026_v42 }
 0x2d8   :  { %v1136_v52 = vadd.f32 %v1134_v50, %v1028_v43  ;;  %v1940_v43 = vld [vmem:[%s4709_s7] sm:$0xf]  ;;  %v2333_v50 = vld [vmem:[#allocation3 + $0xc] sm:$0xf] }
 0x2db   :  { %v1115_v55 = vpop.f32.mrb[4].mxu0 }
 0x2dc   :  { %v1148_v56 = vmul.f32 %v4421_v53, %v1115_v55  ;;  %v1117_v57 = vpop.f32.mrb[5].mxu0 }
 0x2dd   :  { %v1149_v58 = vmul.f32 %v4423_v54, %v1117_v57 }
 0x2de   :  { %v4427_v59 = vadd.f32 %v1148_v56, %v1135_v51  ;;  %v3135_v51 = vld [vmem:[#allocation3 + $0x1c] sm:$0xf] }
 0x2df   :  { %v4429_v60 = vadd.f32 %v1149_v58, %v1136_v52  ;;  %v2512_v52 = vld [vmem:[#allocation3 + $0xc] sm:$0xf] }
 0x2e0   :  { %v1903_v61 = vsel %vm1898_vm3, %v4427_v59, 0.0  ;;  %v1915_v62 = vmul.f32 %v4427_v59, %v4427_v59 }
 0x2e1   :  { %v1904_v63 = vsel %vm1898_vm3, %v4429_v60, 0.0  ;;  %v1916_v1 = vmul.f32 %v4429_v60, %v4429_v60 }
 0x2e2   :  { %v1905_v2 = vadd.f32 %v1904_v63, %v1903_v61  ;;  %v1917_v4 = vsel %vm1898_vm3, %v1915_v62, 0.0 }
 0x2e3   :  { %v1918_v5 = vsel %vm1898_vm3, %v1916_v1, 0.0 }
 0x2e4   :  { %1906 = vadd.xlane.f32.xlu0 %v1905_v2  ;;  %v1919_v6 = vadd.f32 %v1918_v5, %v1917_v4 }
 0x2e8   :  { %1920 = vadd.xlane.f32.xlu0 %v1919_v6 }
 0x2ec   :  { %v1716_v8 = vpop.f32.mrb[4].mxu1 }
 0x2ed   :  { %v1718_v9 = vpop.f32.mrb[5].mxu1  ;;  %v1889_v11 = vmul.f32 %v1716_v8, %v4415_v44 }
 0x2ee   :  { %v1890_v12 = vmul.f32 %v1718_v9, %v4417_v45 }
 0x2f0   :  { %v1799_v13 = vpop.f32.mrb[6].mxu1  ;;  %v1882_v15 = vpop.f32.mrb[6].mxu0 }
 0x2f1   :  { %v1891_v17 = vadd.f32 %v1889_v11, %v1799_v13  ;;  %v1893_v14 = vmul.f32 %v1882_v15, %v4421_v53  ;;  %v1801_v16 = vpop.f32.mrb[7].mxu1  ;;  %v1884_v18 = vpop.f32.mrb[7].mxu0 }
 0x2f2   :  { %v1892_v3 = vadd.f32 %v1890_v12, %v1801_v16  ;;  %v1894_v19 = vmul.f32 %v1884_v18, %v4423_v54 }
 0x2f3   :  { %v1895_v20 = vadd.f32 %v1893_v14, %v1891_v17  ;;  %v4484_v14 = vld [vmem:[#allocation12 + $0x10] sm:$0xf] }
 0x2f4   :  { %v1896_v21 = vadd.f32 %v1894_v19, %v1892_v3  ;;  %v3306_v19 = vld [vmem:[#allocation3 + $0x1c] sm:$0xf] }
 0x2f5   :  { %v1909_v22 = vsel %vm1898_vm3, %v1895_v20, 0.0  ;;  %v1923_v23 = vmul.f32 %v1895_v20, %v1895_v20 }
 0x2f6   :  { %v1910_v24 = vsel %vm1898_vm3, %v1896_v21, 0.0  ;;  %v1924_v7 = vmul.f32 %v1896_v21, %v1896_v21 }
 0x2f7   :  { %v1911_v25 = vadd.f32 %v1910_v24, %v1909_v22  ;;  %v1925_v26 = vsel %vm1898_vm3, %v1923_v23, 0.0 }
 0x2f8   :  { %v1926_v27 = vsel %vm1898_vm3, %v1924_v7, 0.0 }
 0x2f9   :  { %1912 = vadd.xlane.f32.xlu1 %v1911_v25  ;;  %v1927_v28 = vadd.f32 %v1926_v27, %v1925_v26 }
 0x2fb   :  { %1928 = vadd.xlane.f32.xlu0 %v1927_v28 }
 0x371   :  { %v1907_v10 = vpop.xlane.xlu0 %1906 }
 0x375   :  { %v1921_v30 = vpop.xlane.xlu0 %1920 }
 0x386   :  { %v1913_v31 = vpop.xlane.xlu1 %1912 }
 0x387   :  { %v1914_v32 = vadd.f32 %v1913_v31, %v1907_v10 }
 0x388   :  { %v1929_v33 = vpop.xlane.xlu0 %1928 }
 0x389   :  { %v1932_v34 = vmul.f32 0.001953125, %v1914_v32  ;;  %v1930_v35 = vadd.f32 %v1929_v33, %v1921_v30 }
 0x38b   :  { %v1934_v36 = vmul.f32 %v1932_v34, %v1932_v34  ;;  %v1933_v37 = vmul.f32 0.001953125, %v1930_v35 }
 0x38d   :  { %v1935_v38 = vsub.f32 %v1933_v37, %v1934_v36 }
 0x38f   :  { %v1936_v39 = vadd.f32 1e-05, %v1935_v38 }
 0x391   :  { %3867 = vrsqrt.f32 %v1936_v39 }
 0x39b   :  { %v3868_v41 = vpop.eup %3867 }
 0x39c   :  { %v1939_v42 = vmul.f32 %v3868_v41, %v1938_v40 }
 0x39e   :  { %1945 = vperm.xlu1 %3859, %v1939_v42   ;;  %v1941_v46 = vmul.f32 %v1939_v42, %v1932_v34 }
 0x3a0   :  { %v1942_v47 = vsub.f32 %v1940_v43, %v1941_v46 }
 0x3a2   :  { %1952 = vperm.xlu0 %3860, %v1942_v47   ;;  %2615 = vrot.lane.b32.xlu1 %v2607_v48, %s4029_s25 }
 0x3a6   :  { %2710 = vrot.lane.b32.xlu1 %v2702_v49, %s4031_s27  ;;  %2341 = vrot.lane.b32.xlu0 %v2333_v50, %s4027_s18  ;;  %v1984_v50 = vld [vmem:[#allocation12 + $0xc] sm:$0xf] }
 0x3aa   :  { %3143 = vrot.lane.b32.xlu1 %v3135_v51, %s4027_s18  ;;  %2520 = vrot.lane.b32.xlu0 %v2512_v52, %s4030_s0 }
 0x41d   :  { %v1946_v55 = vpop.permute.xlu1 %1945 }
 0x41e   :  { %v1948_v56 = vmul.f32 %v1946_v55, %v4427_v59  ;;  %v1949_v57 = vmul.f32 %v1946_v55, %v4429_v60  ;;  %v1964_v58 = vmul.f32 %v1946_v55, %v1895_v20  ;;  %v1965_v61 = vmul.f32 %v1946_v55, %v1896_v21  ;;  %v3396_v20 = vld [vmem:[#allocation3 + $0x1c] sm:$0xf] }
 0x41f   :  { %v3486_v21 = vld [vmem:[#allocation3 + $0x1c] sm:$0xf] }
 0x421   :  { %v1953_v62 = vpop.permute.xlu0 %1952  ;;  %v2616_v22 = vpop.permute.xlu1 %2615 }
 0x422   :  { %v1955_v63 = vadd.f32 %v1953_v62, %v1948_v56  ;;  %v1956_v1 = vadd.f32 %v1953_v62, %v1949_v57  ;;  %v1966_v2 = vadd.f32 %v1964_v58, %v1953_v62  ;;  %v1967_v4 = vadd.f32 %v1965_v61, %v1953_v62  ;;  %v4557_v62 = vld [vmem:[#allocation12 + $0x4] sm:$0xf] }
 0x424   :  { %v1957_v5 = vmax.f32 %v1955_v63, 0.0  ;;  %v1958_v6 = vmax.f32 %v1956_v1, 0.0  ;;  %v1968_v8 = vmax.f32 %v1966_v2, 0.0  ;;  %v1969_v9 = vmax.f32 %v1967_v4, 0.0  ;;  %v4560_v63 = vld [vmem:[#allocation12] sm:$0xf] }
 0x425   :  { %v4525_v23 = vpop.permute.xlu1 %2710  ;;  %v2342_v24 = vpop.permute.xlu0 %2341 }
 0x426   :  { %v1961_v11 = vcombine.low %v1957_v5, %v1958_v6  ;;  %v4462_v12 = vcombine.low %v1968_v8, %v1969_v9  ;;  %v3871_v59 = vcombine.low %v1958_v6, %v1958_v6  ;;  %v4497_v3 = vcombine.low %v1969_v9, %v1969_v9  ;;  %v2331_v9 = vld [vmem:[#allocation12 + $0x14] sm:$0xf] }
 0x428   :  { %1963 = vst [vmem:[#allocation3 + $0x4] sm:$0xff] %v1961_v11  ;;  %1975 = vst [vmem:[#allocation3 + $0x14] sm:$0xff] %v4462_v12  ;;  %3708 = vmatprep.subr.msk.mxu1 %vm1898_vm3, %v3871_v59 }
 0x429   :  { %3709 = vmatpush1.msk.msra.mxu1 %vm1898_vm3, %v1961_v11  ;;  %v4527_v7 = vpop.permute.xlu1 %3143  ;;  %v4529_v25 = vpop.permute.xlu0 %2520 }
 0x42a   :  { %3710 = vmatmul.mubr.msk.f32.vlgmr.msra.gmra.mrb[8].mxu1 %vm1996_vm14, %v4484_v14 }
 0x42b   :  { %2323 = vmatprep.mubr.f32.mxu1 %v4024_v0 }
 0x42f   :  { %v1978_v60 = vld [vmem:[#allocation3 + $0x8] sm:$0xf]  ;;  %v1977_v13 = vld [vmem:[#allocation3] sm:$0xff]  ;;  %v2803_v15 = vld [vmem:[#allocation3 + $0x18] sm:$0xf] }
 0x430   :  { %1992 = vrot.lane.b32.xlu1 %v1978_v60, %s4026_s1  ;;  %2244 = vrot.lane.b32.xlu0 %v1977_v13, %s4015_s28  ;;  %v2802_v17 = vld [vmem:[#allocation3 + $0x10] sm:$0xff]  ;;  %v1987_v16 = vcombine.high %v1977_v13, %v1977_v13 }
 0x431   :  { %v2806_v18 = vcombine.high %v2802_v17, %v2802_v17 }
 0x434   :  { %2611 = vrot.lane.b32.xlu0 %v1961_v11, %s4029_s25  ;;  %1988 = vrot.lane.b32.xlu1 %v1977_v13, %s4026_s1 }
 0x438   :  { %2427 = vrot.lane.b32.xlu0 %v1978_v60, %s4028_s24  ;;  %2079 = vrot.lane.b32.xlu1 %v1978_v60, %s4025_s8 }
 0x43c   :  { %2248 = vrot.lane.b32.xlu1 %v1978_v60, %s4015_s28  ;;  %2811 = vrot.lane.b32.xlu0 %v2803_v15, %s4026_s1 }
 0x440   :  { %2075 = vrot.lane.b32.xlu1 %v1977_v13, %s4025_s8  ;;  %2807 = vrot.lane.b32.xlu0 %v2802_v17, %s4026_s1 }
 0x444   :  { %2337 = vrot.lane.b32.xlu1 %v1961_v11, %s4027_s18  ;;  %2706 = vrot.lane.b32.xlu0 %v1961_v11, %s4031_s27 }
 0x448   :  { %2423 = vrot.lane.b32.xlu1 %v1977_v13, %s4028_s24  ;;  %3139 = vrot.lane.b32.xlu0 %v4462_v12, %s4027_s18 }
 0x44c   :  { %2516 = vrot.lane.b32.xlu1 %v1961_v11, %s4030_s0  ;;  %3055 = vrot.lane.b32.xlu0 %v2803_v15, %s4015_s28 }
 0x450   :  { %2894 = vrot.lane.b32.xlu1 %v2803_v15, %s4025_s8  ;;  %2613 = vrot.lane.b32.xlu0 %v3871_v59, %s4029_s25 }
 0x454   :  { %2890 = vrot.lane.b32.xlu1 %v2802_v17, %s4025_s8  ;;  %3226 = vrot.lane.b32.xlu0 %v2803_v15, %s4028_s24 }
 0x458   :  { %1990 = vrot.lane.b32.xlu1 %v1987_v16, %s4026_s1  ;;  %2708 = vrot.lane.b32.xlu0 %v3871_v59, %s4031_s27 }
 0x45c   :  { %2077 = vrot.lane.b32.xlu1 %v1987_v16, %s4025_s8  ;;  %2892 = vrot.lane.b32.xlu0 %v2806_v18, %s4025_s8 }
 0x460   :  { %2246 = vrot.lane.b32.xlu1 %v1987_v16, %s4015_s28  ;;  %3141 = vrot.lane.b32.xlu0 %v4497_v3, %s4027_s18 }
 0x464   :  { %2339 = vrot.lane.b32.xlu1 %v3871_v59, %s4027_s18  ;;  %3222 = vrot.lane.b32.xlu0 %v2802_v17, %s4028_s24 }
 0x468   :  { %3051 = vrot.lane.b32.xlu1 %v2802_v17, %s4015_s28  ;;  %3314 = vrot.lane.b32.xlu0 %v3306_v19, %s4030_s0 }
 0x46c   :  { %2425 = vrot.lane.b32.xlu1 %v1987_v16, %s4028_s24  ;;  %3402 = vrot.lane.b32.xlu0 %v4497_v3, %s4029_s25  ;;  %v1982_v16 = vld [vmem:[#allocation12 + $0x8] sm:$0xf] }
 0x470   :  { %3492 = vrot.lane.b32.xlu0 %v4497_v3, %s4031_s27  ;;  %2809 = vrot.lane.b32.xlu1 %v2806_v18, %s4026_s1 }
 0x474   :  { %3400 = vrot.lane.b32.xlu0 %v4462_v12, %s4029_s25  ;;  %2518 = vrot.lane.b32.xlu1 %v3871_v59, %s4030_s0  ;;  %v4578_v59 = vld [vmem:[#allocation12 + $0x1c] sm:$0xf] }
 0x478   :  { %3310 = vrot.lane.b32.xlu1 %v4462_v12, %s4030_s0 }
 0x47c   :  { %3404 = vrot.lane.b32.xlu1 %v3396_v20, %s4029_s25 }
 0x480   :  { %3053 = vrot.lane.b32.xlu1 %v2806_v18, %s4015_s28 }
 0x484   :  { %3224 = vrot.lane.b32.xlu1 %v2806_v18, %s4028_s24 }
 0x488   :  { %3312 = vrot.lane.b32.xlu1 %v4497_v3, %s4030_s0 }
 0x48c   :  { %3494 = vrot.lane.b32.xlu1 %v3486_v21, %s4031_s27 }
 0x490   :  { %3490 = vrot.lane.b32.xlu1 %v4462_v12, %s4031_s27 }
 0x4a2   :  { %v1993_v26 = vpop.permute.xlu1 %1992  ;;  %v2245_v27 = vpop.permute.xlu0 %2244 }
 0x4a6   :  { %v1989_v28 = vpop.permute.xlu1 %1988  ;;  %v2612_v29 = vpop.permute.xlu0 %2611 }
 0x4aa   :  { %v2080_v10 = vpop.permute.xlu1 %2079  ;;  %v2428_v30 = vpop.permute.xlu0 %2427 }
 0x4ae   :  { %v2249_v31 = vpop.permute.xlu1 %2248  ;;  %v4531_v32 = vpop.permute.xlu0 %2811 }
 0x4b2   :  { %v2076_v33 = vpop.permute.xlu1 %2075  ;;  %v4533_v34 = vpop.permute.xlu0 %2807 }
 0x4b6   :  { %v2338_v35 = vpop.permute.xlu1 %2337  ;;  %v4535_v36 = vpop.permute.xlu0 %2706 }
 0x4ba   :  { %v2424_v37 = vpop.permute.xlu1 %2423  ;;  %v4537_v38 = vpop.permute.xlu0 %3139 }
 0x4be   :  { %v4539_v39 = vpop.permute.xlu1 %2516  ;;  %v4541_v40 = vpop.permute.xlu0 %3055 }
 0x4c2   :  { %v2895_v41 = vpop.permute.xlu1 %2894  ;;  %v2614_v42 = vpop.permute.xlu0 %2613 }
 0x4c3   :  { %v2618_v1 = vsel %vm952_vm10, %v2614_v42, %v2616_v22  ;;  %v2617_v2 = vsel %vm952_vm10, %v2612_v29, %v2614_v42  ;;  %v2510_v29 = vld [vmem:[#allocation12 + $0x18] sm:$0xf] }
 0x4c6   :  { %v2891_v43 = vpop.permute.xlu1 %2890  ;;  %v4543_v47 = vpop.permute.xlu0 %3226 }
 0x4ca   :  { %v1991_v46 = vpop.permute.xlu1 %1990  ;;  %v2709_v56 = vpop.permute.xlu0 %2708 }
 0x4cb   :  { %v1994_v48 = vsel %vm351_vm6, %v1989_v28, %v1991_v46  ;;  %v1995_v49 = vsel %vm351_vm6, %v1991_v46, %v1993_v26 }
 0x4cc   :  { %3702 = vmatprep.subr.msk.mxu0 %vm1898_vm3, %v1995_v49 }
 0x4cd   :  { %3703 = vmatpush1.msk.msra.mxu0 %vm1898_vm3, %v1994_v48 }
 0x4ce   :  { %v2078_v51 = vpop.permute.xlu1 %2077  ;;  %3704 = vmatmul.mubr.msk.f32.vlgmr.msra.gmra.mrb[8].mxu0 %vm1996_vm14, %v1984_v50  ;;  %v2893_v5 = vpop.permute.xlu0 %2892 }
 0x4cf   :  { %v2081_v52 = vsel %vm437_vm7, %v2076_v33, %v2078_v51  ;;  %v2082_v55 = vsel %vm437_vm7, %v2078_v51, %v2080_v10  ;;  %2154 = vmatprep.mubr.f32.mxu0 %v4024_v0  ;;  %v2897_v22 = vsel %vm437_vm7, %v2893_v5, %v2895_v41  ;;  %v2713_v10 = vsel %vm1041_vm13, %v2709_v56, %v4525_v23 }
 0x4d0   :  { %3705 = vmatprep.subr.msk.mxu0 %vm1898_vm3, %v2082_v55 }
 0x4d1   :  { %3706 = vmatpush1.msk.msra.mxu0 %vm1898_vm3, %v2081_v52 }
 0x4d2   :  { %v2247_v57 = vpop.permute.xlu1 %2246  ;;  %v3142_v60 = vpop.permute.xlu0 %3141 }
 0x4d3   :  { %v2250_v58 = vsel %vm598_vm8, %v2245_v27, %v2247_v57  ;;  %v2251_v61 = vsel %vm598_vm8, %v2247_v57, %v2249_v31  ;;  %v2712_v31 = vsel %vm1041_vm13, %v4535_v36, %v2709_v56  ;;  %v3145_v23 = vsel %vm691_vm9, %v4537_v38, %v3142_v60 }
 0x4d4   :  { %3711 = vmatprep.subr.msk.mxu1 %vm1898_vm3, %v2251_v61 }
 0x4d5   :  { %3712 = vmatpush1.msk.msra.mxu1 %vm1898_vm3, %v2250_v58 }
 0x4d6   :  { %v2340_v4 = vpop.permute.xlu1 %2339  ;;  %3713 = vmatmul.mubr.msk.f32.vlgmr.msra.gmra.mrb[8].mxu1 %vm1996_vm14, %v4557_v62  ;;  %3723 = vmatprep.subr.msk.mxu1 %vm1898_vm3, %v2618_v1  ;;  %v3223_v19 = vpop.permute.xlu0 %3222 }
 0x4d7   :  { %v2343_v6 = vsel %vm691_vm9, %v2338_v35, %v2340_v4  ;;  %v2344_v8 = vsel %vm691_vm9, %v2340_v4, %v2342_v24  ;;  %3724 = vmatpush1.msk.msra.mxu1 %vm1898_vm3, %v2617_v2  ;;  %3707 = vmatmul.mubr.msk.f32.vlgmr.msra.gmra.mrb[8].mxu0 %vm1996_vm14, %v4560_v63  ;;  %v2896_v24 = vsel %vm437_vm7, %v2891_v43, %v2893_v5 }
 0x4d8   :  { %3714 = vmatprep.subr.msk.mxu0 %vm1898_vm3, %v2344_v8  ;;  %2416 = vmatprep.mubr.f32.mxu0 %v4024_v0 }
 0x4d9   :  { %3715 = vmatpush1.msk.msra.mxu0 %vm1898_vm3, %v2343_v6  ;;  %2690 = vmatprep.mubr.f32.mxu1 %v4024_v0 }
 0x4da   :  { %v3052_v11 = vpop.permute.xlu1 %3051 }
 0x4db   :  { %3716 = vmatmul.mubr.msk.f32.vlgmr.msra.gmra.mrb[10].mxu0 %vm1996_vm14, %v2331_v9 }
 0x4dc   :  { %2502 = vmatprep.mubr.f32.mxu0 %v4024_v0 }
 0x4de   :  { %v2426_v13 = vpop.permute.xlu1 %2425  ;;  %3725 = vmatmul.mubr.msk.f32.vlgmr.msra.gmra.mrb[8].mxu1 %vm1996_vm14, %v4578_v59 }
 0x4df   :  { %v2429_v15 = vsel %vm776_vm11, %v2424_v37, %v2426_v13  ;;  %v2430_v17 = vsel %vm776_vm11, %v2426_v13, %v2428_v30  ;;  %2883 = vmatprep.mubr.f32.mxu1 %v4024_v0  ;;  %v3315_v30 = vpop.permute.xlu0 %3314 }
 0x4e0   :  { %3717 = vmatprep.subr.msk.mxu0 %vm1898_vm3, %v2430_v17 }
 0x4e1   :  { %3718 = vmatpush1.msk.msra.mxu0 %vm1898_vm3, %v2429_v15 }
 0x4e2   :  { %v2810_v18 = vpop.permute.xlu1 %2809 }
 0x4e3   :  { %v2813_v20 = vsel %vm351_vm6, %v4533_v34, %v2810_v18  ;;  %v2814_v21 = vsel %vm351_vm6, %v2810_v18, %v4531_v32  ;;  %3719 = vmatmul.mubr.msk.f32.vlgmr.msra.gmra.mrb[10].mxu0 %vm1996_vm14, %v1982_v16  ;;  %v3146_v32 = vsel %vm691_vm9, %v3142_v60, %v4527_v7  ;;  %v3403_v34 = vpop.permute.xlu0 %3402 }
 0x4e4   :  { %3729 = vmatprep.subr.msk.mxu1 %vm1898_vm3, %v2814_v21  ;;  %2595 = vmatprep.mubr.f32.mxu0 %v4024_v0 }
 0x4e5   :  { %3730 = vmatpush1.msk.msra.mxu1 %vm1898_vm3, %v2813_v20 }
 0x4e6   :  { %v2519_v26 = vpop.permute.xlu1 %2518  ;;  %3731 = vmatmul.mubr.msk.f32.vlgmr.msra.gmra.mrb[10].mxu1 %vm1996_vm14, %v1984_v50  ;;  %3732 = vmatprep.subr.msk.mxu1 %vm1898_vm3, %v2897_v22 }
 0x4e7   :  { %v2522_v27 = vsel %vm863_vm12, %v4539_v39, %v2519_v26  ;;  %v2523_v28 = vsel %vm863_vm12, %v2519_v26, %v4529_v25  ;;  %3733 = vmatpush1.msk.msra.mxu1 %vm1898_vm3, %v2896_v24  ;;  %2966 = vmatprep.mubr.f32.mxu1 %v4024_v0 }
 0x4e8   :  { %3720 = vmatprep.subr.msk.mxu0 %vm1898_vm3, %v2523_v28  ;;  %3735 = vmatprep.subr.msk.mxu1 %vm1898_vm3, %v4497_v3  ;;  %v2700_v3 = vld [vmem:[#allocation12 + $0x20] sm:$0xf] }
 0x4e9   :  { %3721 = vmatpush1.msk.msra.mxu0 %vm1898_vm3, %v2522_v27 }
 0x4ea   :  { %v3311_v25 = vpop.permute.xlu1 %3310  ;;  %3722 = vmatmul.mubr.msk.f32.vlgmr.msra.gmra.mrb[8].mxu0 %vm1996_vm14, %v2510_v29  ;;  %3726 = vmatprep.subr.msk.mxu0 %vm1898_vm3, %v2713_v10 }
 0x4eb   :  { %3727 = vmatpush1.msk.msra.mxu0 %vm1898_vm3, %v2712_v31  ;;  %2785 = vmatprep.mubr.f32.mxu0 %v4024_v0 }
 0x4ec   :  { %3741 = vmatprep.subr.msk.mxu0 %vm1898_vm3, %v3146_v32 }
 0x4ee   :  { %v3405_v33 = vpop.permute.xlu1 %3404  ;;  %3728 = vmatmul.mubr.msk.f32.vlgmr.msra.gmra.mrb[10].mxu0 %vm1996_vm14, %v2700_v3  ;;  %3734 = vmatmul.mubr.msk.f32.vlgmr.msra.gmra.mrb[10].mxu1 %vm1996_vm14, %v4560_v63 }
 0x4ef   :  { %3736 = vmatpush1.msk.msra.mxu1 %vm1898_vm3, %v4462_v12  ;;  %3742 = vmatpush1.msk.msra.mxu0 %vm1898_vm3, %v3145_v23  ;;  %v3493_v12 = vpop.permute.xlu0 %3492  ;;  %v3407_v43 = vsel %vm952_vm10, %v3403_v34, %v3405_v33 }
 0x4f0   :  { %3044 = vmatprep.mubr.f32.mxu1 %v4024_v0  ;;  %3215 = vmatprep.mubr.f32.mxu0 %v4024_v0 }
 0x4f2   :  { %v3054_v7 = vpop.permute.xlu1 %3053  ;;  %3737 = vmatmul.mubr.msk.f32.vlgmr.msra.gmra.mrb[12].mxu1 %vm1996_vm14, %v4484_v14  ;;  %3743 = vmatmul.mubr.msk.f32.vlgmr.msra.gmra.mrb[12].mxu0 %vm1996_vm14, %v2331_v9 }
 0x4f3   :  { %v3057_v35 = vsel %vm598_vm8, %v3052_v11, %v3054_v7  ;;  %v3058_v36 = vsel %vm598_vm8, %v3054_v7, %v4541_v40  ;;  %3127 = vmatprep.mubr.f32.mxu1 %v4024_v0  ;;  %3298 = vmatprep.mubr.f32.mxu0 %v4024_v0  ;;  %v3401_v40 = vpop.permute.xlu0 %3400 }
 0x4f4   :  { %3738 = vmatprep.subr.msk.mxu1 %vm1898_vm3, %v3058_v36  ;;  %v3406_v46 = vsel %vm952_vm10, %v3401_v40, %v3403_v34  ;;  %v3617_v40 = vld [vmem:[%s4711_s9] sm:$0xf]  ;;  %s4033_s9 = smov [#allocation13]  }
 0x4f5   :  { %3739 = vmatpush1.msk.msra.mxu1 %vm1898_vm3, %v3057_v35  ;;  %s3660_s1 = sshll.u32 %s4033_s9, 4  ;;  %s3661_s1 = int_to_ptr.vmem [resolvable:$true] %s3660_s1 }
 0x4f6   :  { %v3225_v37 = vpop.permute.xlu1 %3224  ;;  %p3988_p13 = scmp.lt.s32.totalorder %s3661_s1, %s3661_s1 }
 0x4f7   :  { %v3228_v38 = vsel %vm776_vm11, %v3223_v19, %v3225_v37  ;;  %v3229_v14 = vsel %vm776_vm11, %v3225_v37, %v4543_v47 }
 0x4f8   :  { %3744 = vmatprep.subr.msk.mxu0 %vm1898_vm3, %v3229_v14 }
 0x4f9   :  { %3745 = vmatpush1.msk.msra.mxu0 %vm1898_vm3, %v3228_v38 }
 0x4fa   :  { %v3313_v39 = vpop.permute.xlu1 %3312  ;;  %3740 = vmatmul.mubr.msk.f32.vlgmr.msra.gmra.mrb[12].mxu1 %vm1996_vm14, %v4557_v62  ;;  %3746 = vmatmul.mubr.msk.f32.vlgmr.msra.gmra.mrb[12].mxu0 %vm1996_vm14, %v1982_v16 }
 0x4fb   :  { %v3316_v41 = vsel %vm863_vm12, %v3311_v25, %v3313_v39  ;;  %v3317_v42 = vsel %vm863_vm12, %v3313_v39, %v3315_v30  ;;  %3386 = vmatprep.mubr.f32.mxu1 %v4024_v0  ;;  %3566 = vmatprep.mubr.f32.mxu0 %v4024_v0 }
 0x4fc   :  { %3747 = vmatprep.subr.msk.mxu1 %vm1898_vm3, %v3317_v42 }
 0x4fd   :  { %3748 = vmatpush1.msk.msra.mxu1 %vm1898_vm3, %v3316_v41 }
 0x4fe   :  { %v3495_v47 = vpop.permute.xlu1 %3494  ;;  %3749 = vmatmul.mubr.msk.f32.vlgmr.msra.gmra.mrb[10].mxu1 %vm1996_vm14, %v2510_v29  ;;  %3750 = vmatprep.subr.msk.mxu1 %vm1898_vm3, %v3407_v43  ;;  %v3619_v43 = vld [vmem:[%s4712_s10] sm:$0xf]  ;;  %s3983_s10 = scalar_lea.vmem %s3661_s1, 256 }
 0x4ff   :  { %v3497_v48 = vsel %vm1041_vm13, %v3493_v12, %v3495_v47  ;;  %3751 = vmatpush1.msk.msra.mxu1 %vm1898_vm3, %v3406_v46  ;;  %3476 = vmatprep.mubr.f32.mxu1 %v4024_v0  ;;  %p3984_p12 = scmp.ne.s32.totalorder %s3661_s1, %s3983_s10  ;;  %p3989_p0 = scmp.lt.s32.totalorder %s3983_s10, %s3983_s10 }
 0x500   :  { %3753 = vmatprep.subr.msk.mxu0 %vm1898_vm3, %v3497_v48 }
 0x501   :  { %p3990_p1 = por %p3989_p0, %p3988_p13 }
 0x502   :  { %v3491_v49 = vpop.permute.xlu1 %3490  ;;  %3752 = vmatmul.mubr.msk.f32.vlgmr.msra.gmra.mrb[12].mxu1 %vm1996_vm14, %v4578_v59 }
 0x503   :  { %v3496_v50 = vsel %vm1041_vm13, %v3491_v49, %v3493_v12  ;;  %p3991_p2 = pnand %p3990_p1, %p3984_p12 }
 0x504   :  { %3754 = vmatpush1.msk.msra.mxu0 %vm1898_vm3, %v3496_v50 }
 0x505   :  { %3755 = vmatmul.mubr.msk.f32.vlgmr.msra.gmra.mrb[12].mxu0 %vm1996_vm14, %v2700_v3 }
 0x5b1   :  { %v2692_v51 = vpop.f32.mrb[8].mxu1 }
 0x5b2   :  { %v2694_v52 = vpop.f32.mrb[9].mxu1 }
 0x5bd   :  { %v2597_v55 = vpop.f32.mrb[8].mxu0 }
 0x5be   :  { %v2794_v56 = vmul.f32 %v2597_v55, %v4415_v44  ;;  %v2599_v57 = vpop.f32.mrb[9].mxu0 }
 0x5bf   :  { %v2795_v0 = vmul.f32 %v2599_v57, %v4417_v45 }
 0x5c0   :  { %v2796_v58 = vadd.f32 %v2794_v56, %v2692_v51 }
 0x5c1   :  { %v2797_v61 = vadd.f32 %v2795_v0, %v2694_v52  ;;  %v2787_v62 = vpop.f32.mrb[10].mxu0 }
 0x5c2   :  { %v2798_v63 = vmul.f32 %v2787_v62, %v4421_v53  ;;  %v2789_v1 = vpop.f32.mrb[11].mxu0 }
 0x5c3   :  { %v2799_v2 = vmul.f32 %v2789_v1, %v4423_v54 }
 0x5c4   :  { %v2800_v4 = vadd.f32 %v2798_v63, %v2796_v58 }
 0x5c5   :  { %v2801_v5 = vadd.f32 %v2799_v2, %v2797_v61 }
 0x5c6   :  { %v3583_v6 = vsel %vm1898_vm3, %v2800_v4, 0.0  ;;  %v3595_v8 = vmul.f32 %v2800_v4, %v2800_v4 }
 0x5c7   :  { %v3584_v9 = vsel %vm1898_vm3, %v2801_v5, 0.0  ;;  %v3596_v11 = vmul.f32 %v2801_v5, %v2801_v5 }
 0x5c8   :  { %v3585_v59 = vadd.f32 %v3584_v9, %v3583_v6  ;;  %v3597_v60 = vsel %vm1898_vm3, %v3595_v8, 0.0 }
 0x5c9   :  { %v3598_v13 = vsel %vm1898_vm3, %v3596_v11, 0.0 }
 0x5ca   :  { %3586 = vadd.xlane.f32.xlu0 %v3585_v59  ;;  %v3599_v15 = vadd.f32 %v3598_v13, %v3597_v60 }
 0x5ce   :  { %3600 = vadd.xlane.f32.xlu0 %v3599_v15 }
 0x5d1   :  { %v3388_v17 = vpop.f32.mrb[10].mxu1 }
 0x5d2   :  { %v3390_v16 = vpop.f32.mrb[11].mxu1  ;;  %v3575_v18 = vmul.f32 %v3388_v17, %v4415_v44 }
 0x5d3   :  { %v3576_v19 = vmul.f32 %v3390_v16, %v4417_v45 }
 0x5d5   :  { %v3478_v20 = vpop.f32.mrb[12].mxu1 }
 0x5d6   :  { %v3577_v21 = vadd.f32 %v3575_v18, %v3478_v20  ;;  %v3480_v22 = vpop.f32.mrb[13].mxu1 }
 0x5d7   :  { %v3578_v24 = vadd.f32 %v3576_v19, %v3480_v22 }
 0x5d8   :  { %v3568_v26 = vpop.f32.mrb[12].mxu0 }
 0x5d9   :  { %v3579_v27 = vmul.f32 %v3568_v26, %v4421_v53  ;;  %v3570_v28 = vpop.f32.mrb[13].mxu0 }
 0x5da   :  { %v3580_v29 = vmul.f32 %v3570_v28, %v4423_v54 }
 0x5db   :  { %v3581_v10 = vadd.f32 %v3579_v27, %v3577_v21 }
 0x5dc   :  { %v3582_v30 = vadd.f32 %v3580_v29, %v3578_v24 }
 0x5dd   :  { %v3589_v31 = vsel %vm1898_vm3, %v3581_v10, 0.0  ;;  %v3603_v25 = vmul.f32 %v3581_v10, %v3581_v10 }
 0x5de   :  { %v3590_v32 = vsel %vm1898_vm3, %v3582_v30, 0.0  ;;  %v3604_v44 = vmul.f32 %v3582_v30, %v3582_v30 }
 0x5df   :  { %v3591_v3 = vadd.f32 %v3590_v32, %v3589_v31  ;;  %v3605_v45 = vsel %vm1898_vm3, %v3603_v25, 0.0 }
 0x5e0   :  { %v3606_v23 = vsel %vm1898_vm3, %v3604_v44, 0.0 }
 0x5e1   :  { %3592 = vadd.xlane.f32.xlu1 %v3591_v3  ;;  %v3607_v33 = vadd.f32 %v3606_v23, %v3605_v45 }
 0x5e3   :  { %3608 = vadd.xlane.f32.xlu0 %v3607_v33 }
 0x657   :  { %v3587_v53 = vpop.xlane.xlu0 %3586 }
 0x65b   :  { %v3601_v34 = vpop.xlane.xlu0 %3600 }
 0x66e   :  { %v3593_v7 = vpop.xlane.xlu1 %3592 }
 0x66f   :  { %v3594_v54 = vadd.f32 %v3593_v7, %v3587_v53 }
 0x670   :  { %v3609_v35 = vpop.xlane.xlu0 %3608 }
 0x671   :  { %v3611_v36 = vmul.f32 0.001953125, %v3594_v54  ;;  %v3610_v12 = vadd.f32 %v3609_v35, %v3601_v34 }
 0x673   :  { %v3613_v37 = vmul.f32 %v3611_v36, %v3611_v36  ;;  %v3612_v38 = vmul.f32 0.001953125, %v3610_v12 }
 0x675   :  { %v3614_v14 = vsub.f32 %v3612_v38, %v3613_v37 }
 0x677   :  { %v3615_v39 = vadd.f32 1e-05, %v3614_v14 }
 0x679   :  { %3869 = vrsqrt.f32 %v3615_v39 }
 0x683   :  { %v3870_v41 = vpop.eup %3869 }
 0x684   :  { %v3618_v42 = vmul.f32 %v3870_v41, %v3617_v40 }
 0x686   :  { %3624 = vperm.xlu1 %3859, %v3618_v42   ;;  %v3620_v46 = vmul.f32 %v3618_v42, %v3611_v36 }
 0x688   :  { %v3621_v47 = vsub.f32 %v3619_v43, %v3620_v46 }
 0x68a   :  { %3631 = vperm.xlu0 %3860, %v3621_v47  }
 0x705   :  { %v3625_v48 = vpop.permute.xlu1 %3624 }
 0x706   :  { %v3627_v49 = vmul.f32 %v3625_v48, %v2800_v4  ;;  %v3628_v50 = vmul.f32 %v3625_v48, %v2801_v5  ;;  %v3643_v51 = vmul.f32 %v3625_v48, %v3581_v10  ;;  %v3644_v52 = vmul.f32 %v3625_v48, %v3582_v30 }
 0x709   :  { %v3632_v55 = vpop.permute.xlu0 %3631 }
 0x70a   :  { %v3634_v56 = vadd.f32 %v3632_v55, %v3627_v49  ;;  %v3635_v57 = vadd.f32 %v3632_v55, %v3628_v50  ;;  %v3645_v0 = vadd.f32 %v3643_v51, %v3632_v55  ;;  %v3646_v58 = vadd.f32 %v3644_v52, %v3632_v55 }
 0x70c   :  { %v3636_v61 = vmax.f32 %v3634_v56, 0.0  ;;  %v3637_v62 = vmax.f32 %v3635_v57, 0.0  ;;  %v3647_v63 = vmax.f32 %v3645_v0, 0.0  ;;  %v3648_v1 = vmax.f32 %v3646_v58, 0.0 }
 0x70e   :  { %v3640_v2 = vcombine.low %v3636_v61, %v3637_v62  ;;  %v3651_v6 = vcombine.low %v3647_v63, %v3648_v1 }
 0x710   :  { %3642 = vst [vmem:[#allocation13] sm:$0xff] %v3640_v2  ;;  %3654 = vst [vmem:[#allocation13 + $0x8] sm:$0xff] %v3651_v6 }
 0x711   :  { %3994 = shalt.err (!%p3991_p2)
}
 0x712   :  { %s3995_s25 = scalar_lea.hbm %s4713_s11, 256 }
 0x713   :  { %p3996_p3 = scmp.ne.s32.totalorder %s4713_s11, %s3995_s25  ;;  %p3999_p4 = scmp.lt.u32.totalorder %s3995_s25, %s4713_s11 }
 0x715   :  { %p4001_p5 = pnand %p3999_p4, %p3996_p3 }
 0x717   :  { %4004 = shalt.err (!%p4001_p5)
}
 0x718   :  { %s4034_s13 = smov 128   ;;  %s4035_s17 = smov 8  }
 0x719   :  { %3666 = dma.vmem_to_hbm [thread:$0]  %s3661_s1, 256, %s4713_s11, [#allocation6], %s4034_s13, %s4034_s13, %s4035_s17  }
 0x71a   :  { %4011 = dma.done.wait [#allocation6], 256  }
 0x71b   :  { %4012 = vsyncadd [#allocation6], 4294967040 }
 0x71c   :  { %3670 = vsyncpa [#allocation5], 1 }
 0x71d   :  { %3671 = vsyncpa [#allocation8], 1 }
 0x71e   :  { %3672 = vsyncpa [#allocation11], 1 }
 0x71f   :  { %3673 = vsyncpa [#allocation6], 1 }

</bundles_post_ra>
